<compile_context>
chip_gen: v6e
topology: v6e:2x2x1
jax: 0.10.0
libtpu: 0.0.40
codegen_flags: <defaults>
</compile_context>

<pallas_src>
import jax
import jax.numpy as jnp
from jax.experimental import pallas as pl
from jax.experimental.pallas import tpu as pltpu


def _sigmoid(x):
    # tanh-based logistic: single EUP op, numerically stable (used by the JAX reference;
    # the kernel folds the inner 0.5 into the weights instead).
    return 0.5 * (jnp.tanh(0.5 * x) + 1.0)


# ---------------- fused kernel (all LSTM layers + FC + batch-axis softmax) ----------------
def _make_fused_kernel(num_layers, T, B, H):
    def kernel(*refs):
        # refs = [x2d, (w_ih, w_hh, b) * num_layers, fc_w, fc_b, out, seq_scratch, xproj_scratch]
        x_ref = refs[0]
        layer_refs = [tuple(refs[1 + 3 * l: 4 + 3 * l]) for l in range(num_layers)]
        fcw_ref = refs[1 + 3 * num_layers]
        fcb_ref = refs[2 + 3 * num_layers]
        out_ref = refs[3 + 3 * num_layers]
        seq_ref = refs[4 + 3 * num_layers]      # VMEM (T*B, H)  bf16 hidden-sequence buffer
        xp_ref = refs[5 + 3 * num_layers]       # VMEM (T*B, 4H) f32 hoisted input projection

        layer_in_bf = x_ref[...].astype(jnp.bfloat16)            # (T*B, in) bf16
        for wih_ref, whh_ref, b_ref in layer_refs:
            # ---- hoisted input projection: one big MXU matmul for the whole sequence ----
            # (gate columns already reordered to (i,f,o,g) and sigmoid columns prescaled
            #  by 0.5 on the host side; bias is the combined b_ih + b_hh, same layout)
            xp_ref[...] = (jnp.dot(layer_in_bf, wih_ref[...],
                                   preferred_element_type=jnp.float32)
                           + b_ref[...])                          # (T*B, 4H) f32
            whh = whh_ref[...]                                    # (H, 4H) bf16, fused operand

            h = jnp.zeros((B, H), jnp.bfloat16)
            c = jnp.zeros((B, H), jnp.float32)
            # Statically unrolled recurrence (T is a small constant); only the single fused
            # (B,H)x(H,4H) matmul + 2 EUP pushes sit on the serial per-step path.
            # NOTE: if T grows, switch to lax.fori_loop(..., unroll=True) to bound live ranges.
            for t in range(T):
                rows = slice(t * B, (t + 1) * B)
                gates = xp_ref[rows, :] + jnp.dot(h, whh,
                                                  preferred_element_type=jnp.float32)  # (B,4H)
                tg = jnp.tanh(gates)                              # 1 EUP push for all 4 gates
                sig = 0.5 * (tg[:, 0:3 * H] + 1.0)                # sigmoid(i,f,o): 0.5 was folded
                i_g = sig[:, 0:H]
                f_g = sig[:, H:2 * H]
                o_g = sig[:, 2 * H:3 * H]
                g_g = tg[:, 3 * H:4 * H]
                c = f_g * c + i_g * g_g
                h = (o_g * jnp.tanh(c)).astype(jnp.bfloat16)      # 2nd (last) EUP push
                seq_ref[rows, :] = h
            layer_in_bf = seq_ref[...]            # (T*B, H) bf16: stays in VMEM, no HBM trip

        # ---- FC (+ bias) as one matmul over the whole sequence ----
        logits = (jnp.dot(layer_in_bf, fcw_ref[...],
                          preferred_element_type=jnp.float32)
                  + fcb_ref[...])                                 # (T*B, O) f32

        # ---- legacy nn.Softmax() dim=0 on the (B, T, O) output -> softmax over the BATCH
        # axis, vectorized over all T groups in one pass.  Each group is B contiguous
        # time-major rows, so group sums / their broadcast-back are two tiny segment-sum
        # matmuls (no per-t loop, no T masked partial stores).
        TB = T * B
        m = jnp.max(logits, axis=0, keepdims=True)                # (1,O): constant per column
        e = jnp.exp(logits - m)                                   # valid stabilizer for each group
        r_idx = jax.lax.broadcasted_iota(jnp.int32, (T, TB), 1)
        t_idx = jax.lax.broadcasted_iota(jnp.int32, (T, TB), 0)
        sel = ((r_idx >= t_idx * B) & (r_idx < (t_idx + 1) * B)).astype(jnp.float32)   # (T, T*B)
        r2 = jax.lax.broadcasted_iota(jnp.int32, (TB, T), 0)
        t2 = jax.lax.broadcasted_iota(jnp.int32, (TB, T), 1)
        selT = ((r2 >= t2 * B) & (r2 < (t2 + 1) * B)).astype(jnp.float32)              # (T*B, T)
        group_sum = jnp.dot(sel, e, preferred_element_type=jnp.float32)                # (T, O)
        denom = jnp.dot(selT, group_sum, preferred_element_type=jnp.float32)           # (T*B, O)
        out_ref[...] = (e * pl.reciprocal(denom, approx=True)).astype(out_ref.dtype)   # one store

    return kernel


def _full_spec(shape):
    rank = len(shape)
    return pl.BlockSpec(shape, lambda i: (0,) * rank)


# ---------------- model wrapper ----------------
def lstm_model_forward(x_bf, params):
    """x_bf: (B, T, input_size) batch-first like PyTorch; returns (B, T, output_size)."""
    B, T, I = x_bf.shape
    H = params["lstm"][0][1].shape[0]           # w_hh is (H, 4H)
    O = params["fc_w"].shape[1]
    num_layers = len(params["lstm"])

    # time-major, flattened to (T*B, I): each timestep's batch rows are contiguous.
    x2d = jnp.transpose(x_bf, (1, 0, 2)).reshape(T * B, I)

    def reorder_prescale(mat4h):
        # (..., 4H) in PyTorch gate order (i, f, g, o) -> (i, f, o, g), with the three
        # sigmoid gates prescaled by 0.5 so the kernel's tanh-sigmoid needs no per-step mul.
        # Scaling by a power of two is exact, so this does not change results.
        i = mat4h[..., 0 * H:1 * H]
        f = mat4h[..., 1 * H:2 * H]
        g = mat4h[..., 2 * H:3 * H]
        o = mat4h[..., 3 * H:4 * H]
        return jnp.concatenate([0.5 * i, 0.5 * f, 0.5 * o, g], axis=-1)

    args = [x2d]
    in_specs = [_full_spec((T * B, I))]
    for (w_ih, w_hh, b) in params["lstm"]:
        in_sz = w_ih.shape[0]
        args += [reorder_prescale(w_ih).astype(jnp.bfloat16),   # (in, 4H) bf16
                 reorder_prescale(w_hh).astype(jnp.bfloat16),   # (H, 4H)  bf16, single fused operand
                 reorder_prescale(b)]                           # (1, 4H)  f32 combined bias
        in_specs += [_full_spec((in_sz, 4 * H)),
                     _full_spec((H, 4 * H)),
                     _full_spec((1, 4 * H))]
    args += [params["fc_w"].astype(jnp.bfloat16), params["fc_b"]]
    in_specs += [_full_spec((H, O)), _full_spec((1, O))]

    out2d = pl.pallas_call(
        _make_fused_kernel(num_layers, T, B, H),
        out_shape=jax.ShapeDtypeStruct((T * B, O), jnp.float32),
        grid_spec=pltpu.PrefetchScalarGridSpec(
            num_scalar_prefetch=0,
            grid=(1,),                            # single invocation: no per-step grid overhead
            in_specs=in_specs,
            out_specs=_full_spec((T * B, O)),
            scratch_shapes=[pltpu.VMEM((T * B, H), jnp.bfloat16),      # hidden sequence (bf16)
                            pltpu.VMEM((T * B, 4 * H), jnp.float32)],  # hoisted input projection
        ),
        compiler_params=pltpu.CompilerParams(
            dimension_semantics=("arbitrary",),
            # Explicit (and generous for these shapes) scoped-VMEM limit; at large H on v7x
            # (64 MiB physical VMEM) the full-array weight specs are the first thing to tile.
            vmem_limit_bytes=32 * 1024 * 1024),
    )(*args)

    return jnp.transpose(out2d.reshape(T, B, O), (1, 0, 2))


# ---------------- pure-JAX reference (mirrors the kernel's bf16-matmul / f32-accum math) ----------------
def reference_forward(x_bf, params):
    B, T, I = x_bf.shape
    layer_in = jnp.transpose(x_bf, (1, 0, 2)).reshape(T * B, I)
    for (w_ih, w_hh, b) in params["lstm"]:
        H = w_hh.shape[0]
        wih_bf = w_ih.astype(jnp.bfloat16)
        whh_bf = w_hh.astype(jnp.bfloat16)
        xproj = jnp.dot(layer_in.astype(jnp.bfloat16), wih_bf,
                        preferred_element_type=jnp.float32) + b            # (T*B, 4H)
        xproj = xproj.reshape(T, B, 4 * H)

        def step(carry, xp_t, whh_bf=whh_bf, H=H):
            h, c = carry
            gates = xp_t + jnp.dot(h.astype(jnp.bfloat16), whh_bf,
                                   preferred_element_type=jnp.float32)
            i = _sigmoid(gates[:, 0 * H:1 * H])
            f = _sigmoid(gates[:, 1 * H:2 * H])
            g = jnp.tanh(gates[:, 2 * H:3 * H])
            o = _sigmoid(gates[:, 3 * H:4 * H])
            c = f * c + i * g
            h = o * jnp.tanh(c)
            return (h, c), h

        init = (jnp.zeros((B, H), jnp.float32), jnp.zeros((B, H), jnp.float32))
        _, hs = jax.lax.scan(step, init, xproj)                             # (T, B, H)
        layer_in = hs.reshape(T * B, H)

    logits = jnp.dot(layer_in.astype(jnp.bfloat16), params["fc_w"].astype(jnp.bfloat16),
                     preferred_element_type=jnp.float32) + params["fc_b"]   # (T*B, O)
    logits = logits.reshape(T, B, -1)
    m = jnp.max(logits, axis=1, keepdims=True)                              # batch axis
    e = jnp.exp(logits - m)
    probs = e / jnp.sum(e, axis=1, keepdims=True)
    return jnp.transpose(probs, (1, 0, 2))


# ---------------- deterministic parameter init (PyTorch-style uniform(-1/sqrt(H), 1/sqrt(H))) ----------------
def init_params(key, input_size, hidden_size, num_layers, output_size):
    k = 1.0 / float(hidden_size) ** 0.5
    params = {"lstm": []}
    for layer in range(num_layers):
        in_sz = input_size if layer == 0 else hidden_size
        key, k1, k2, k3, k4 = jax.random.split(key, 5)
        w_ih = jax.random.uniform(k1, (4 * hidden_size, in_sz), jnp.float32, -k, k)
        w_hh = jax.random.uniform(k2, (4 * hidden_size, hidden_size), jnp.float32, -k, k)
        b_ih = jax.random.uniform(k3, (4 * hidden_size,), jnp.float32, -k, k)
        b_hh = jax.random.uniform(k4, (4 * hidden_size,), jnp.float32, -k, k)
        # store pre-transposed for (B,in) @ (in,4H) matmuls; combine the two biases
        params["lstm"].append((w_ih.T, w_hh.T, (b_ih + b_hh).reshape(1, -1)))
    key, k5, k6 = jax.random.split(key, 3)
    fc_w = jax.random.uniform(k5, (output_size, hidden_size), jnp.float32, -k, k)
    fc_b = jax.random.uniform(k6, (output_size,), jnp.float32, -k, k)
    params["fc_w"] = fc_w.T
    params["fc_b"] = fc_b.reshape(1, -1)
    return params


if __name__ == "__main__":
    B, T = 2, 8
    input_size, hidden_size, num_layers, output_size = 16, 32, 2, 8

    key = jax.random.PRNGKey(0)
    key, kx = jax.random.split(key)
    x = jax.random.normal(kx, (B, T, input_size), jnp.float32)
    params = init_params(key, input_size, hidden_size, num_layers, output_size)

    out = jax.block_until_ready(jax.jit(lstm_model_forward)(x, params))
    ref = jax.block_until_ready(reference_forward(x, params))

    assert out.shape == (B, T, output_size)
    # Tolerance covers (a) occasional 1-ulp bf16 flips of h between kernel and reference and
    # (b) the ~2^-12 relative error of the approx EUP reciprocal in the softmax; real bugs
    # produce errors orders of magnitude larger on these softmax probabilities.
    assert jnp.allclose(out, ref, rtol=2e-3, atol=3e-4), (
        "mismatch vs JAX reference: max abs diff = %e"
        % float(jnp.max(jnp.abs(out - ref))))

    print("KERNEL_OK")
</pallas_src>

<mosaic_0001>
module attributes {stable_mosaic.version = 11 : i64} {
  func.func @kernel(%arg0: i32, %arg1: memref<16x16xf32, #tpu.memory_space<vmem>>, %arg2: memref<16x128xbf16, #tpu.memory_space<vmem>>, %arg3: memref<32x128xbf16, #tpu.memory_space<vmem>>, %arg4: memref<1x128xf32, #tpu.memory_space<vmem>>, %arg5: memref<32x128xbf16, #tpu.memory_space<vmem>>, %arg6: memref<32x128xbf16, #tpu.memory_space<vmem>>, %arg7: memref<1x128xf32, #tpu.memory_space<vmem>>, %arg8: memref<32x8xbf16, #tpu.memory_space<vmem>>, %arg9: memref<1x8xf32, #tpu.memory_space<vmem>>, %arg10: memref<16x8xf32, #tpu.memory_space<vmem>>, %arg11: memref<16x32xbf16, #tpu.memory_space<vmem>>, %arg12: memref<16x128xf32, #tpu.memory_space<vmem>>) attributes {dimension_semantics = [#tpu.dimension_semantics<arbitrary>], iteration_bounds = array<i64: 1>, scalar_prefetch = 0 : i64, scratch_operands = 2 : i64, tpu.core_type = #tpu.core_type<tc>, window_params = [{pipeline_mode = #tpu.pipeline_mode<synchronous>, transform_indices = @transform_0, window_bounds = array<i64: 16, 16>}, {pipeline_mode = #tpu.pipeline_mode<synchronous>, transform_indices = @transform_1, window_bounds = array<i64: 16, 128>}, {pipeline_mode = #tpu.pipeline_mode<synchronous>, transform_indices = @transform_2, window_bounds = array<i64: 32, 128>}, {pipeline_mode = #tpu.pipeline_mode<synchronous>, transform_indices = @transform_3, window_bounds = array<i64: 1, 128>}, {pipeline_mode = #tpu.pipeline_mode<synchronous>, transform_indices = @transform_4, window_bounds = array<i64: 32, 128>}, {pipeline_mode = #tpu.pipeline_mode<synchronous>, transform_indices = @transform_5, window_bounds = array<i64: 32, 128>}, {pipeline_mode = #tpu.pipeline_mode<synchronous>, transform_indices = @transform_6, window_bounds = array<i64: 1, 128>}, {pipeline_mode = #tpu.pipeline_mode<synchronous>, transform_indices = @transform_7, window_bounds = array<i64: 32, 8>}, {pipeline_mode = #tpu.pipeline_mode<synchronous>, transform_indices = @transform_8, window_bounds = array<i64: 1, 8>}, {pipeline_mode = #tpu.pipeline_mode<synchronous>, transform_indices = @transform_9, window_bounds = array<i64: 16, 8>}]} {
    %c0 = arith.constant 0 : index
    %c0_0 = arith.constant 0 : index
    %0 = vector.load %arg1[%c0, %c0_0] : memref<16x16xf32, #tpu.memory_space<vmem>>, vector<16x16xf32>
    %1 = arith.truncf %0 : vector<16x16xf32> to vector<16x16xbf16>
    %c0_1 = arith.constant 0 : index
    %c0_2 = arith.constant 0 : index
    %2 = vector.load %arg2[%c0_1, %c0_2] : memref<16x128xbf16, #tpu.memory_space<vmem>>, vector<16x128xbf16>
    %cst = arith.constant dense<0.000000e+00> : vector<16x128xf32>
    %3 = tpu.matmul %1, %2, %cst {dimension_numbers = #tpu.dot_dimension_numbers<[1], [0], [0], [1], [0, 0, 1, 1], [], []>} : vector<16x16xbf16>, vector<16x128xbf16>, vector<16x128xf32> -> vector<16x128xf32>
    %c0_3 = arith.constant 0 : index
    %c0_4 = arith.constant 0 : index
    %4 = vector.load %arg4[%c0_3, %c0_4] : memref<1x128xf32, #tpu.memory_space<vmem>>, vector<1x128xf32>
    %5 = vector.broadcast %4 : vector<1x128xf32> to vector<16x128xf32>
    %6 = arith.addf %3, %5 : vector<16x128xf32>
    %c0_5 = arith.constant 0 : index
    %c0_6 = arith.constant 0 : index
    %7 = vector.load %arg12[%c0_5, %c0_6] : memref<16x128xf32, #tpu.memory_space<vmem>>, vector<16x128xf32>
    tpu.vector_store %arg12[%c0_5, %c0_6], %6 {strides = array<i32>} : memref<16x128xf32, #tpu.memory_space<vmem>>, vector<16x128xf32>,
    %c0_7 = arith.constant 0 : index
    %c0_8 = arith.constant 0 : index
    %8 = vector.load %arg3[%c0_7, %c0_8] : memref<32x128xbf16, #tpu.memory_space<vmem>>, vector<32x128xbf16>
    %cst_9 = arith.constant 0.000000e+00 : bf16
    %9 = vector.broadcast %cst_9 : bf16 to vector<2x32xbf16>
    %cst_10 = arith.constant 0.000000e+00 : f32
    %10 = vector.broadcast %cst_10 : f32 to vector<2x32xf32>
    %c0_11 = arith.constant 0 : index
    %c0_12 = arith.constant 0 : index
    %11 = vector.load %arg12[%c0_11, %c0_12] : memref<16x128xf32, #tpu.memory_space<vmem>>, vector<2x128xf32>
    %cst_13 = arith.constant dense<0.000000e+00> : vector<2x128xf32>
    %12 = tpu.matmul %9, %8, %cst_13 {dimension_numbers = #tpu.dot_dimension_numbers<[1], [0], [0], [1], [0, 0, 1, 1], [], []>} : vector<2x32xbf16>, vector<32x128xbf16>, vector<2x128xf32> -> vector<2x128xf32>
    %13 = arith.addf %11, %12 : vector<2x128xf32>
    %14 = math.tanh %13 : vector<2x128xf32>
    %15 = vector.extract_strided_slice %14 {offsets = [0, 0], sizes = [2, 96], strides = [1, 1]} : vector<2x128xf32> to vector<2x96xf32>
    %cst_14 = arith.constant 1.000000e+00 : f32
    %16 = vector.broadcast %cst_14 : f32 to vector<2x96xf32>
    %17 = arith.addf %15, %16 : vector<2x96xf32>
    %cst_15 = arith.constant 5.000000e-01 : f32
    %18 = vector.broadcast %cst_15 : f32 to vector<2x96xf32>
    %19 = arith.mulf %18, %17 : vector<2x96xf32>
    %20 = vector.extract_strided_slice %19 {offsets = [0, 0], sizes = [2, 32], strides = [1, 1]} : vector<2x96xf32> to vector<2x32xf32>
    %21 = vector.extract_strided_slice %19 {offsets = [0, 32], sizes = [2, 32], strides = [1, 1]} : vector<2x96xf32> to vector<2x32xf32>
    %22 = vector.extract_strided_slice %19 {offsets = [0, 64], sizes = [2, 32], strides = [1, 1]} : vector<2x96xf32> to vector<2x32xf32>
    %23 = vector.extract_strided_slice %14 {offsets = [0, 96], sizes = [2, 32], strides = [1, 1]} : vector<2x128xf32> to vector<2x32xf32>
    %24 = arith.mulf %21, %10 : vector<2x32xf32>
    %25 = arith.mulf %20, %23 : vector<2x32xf32>
    %26 = arith.addf %24, %25 : vector<2x32xf32>
    %27 = math.tanh %26 : vector<2x32xf32>
    %28 = arith.mulf %22, %27 : vector<2x32xf32>
    %29 = arith.truncf %28 : vector<2x32xf32> to vector<2x32xbf16>
    %c0_16 = arith.constant 0 : index
    %c0_17 = arith.constant 0 : index
    %30 = vector.load %arg11[%c0_16, %c0_17] : memref<16x32xbf16, #tpu.memory_space<vmem>>, vector<2x32xbf16>
    tpu.vector_store %arg11[%c0_16, %c0_17], %29 {strides = array<i32>} : memref<16x32xbf16, #tpu.memory_space<vmem>>, vector<2x32xbf16>,
    %c2 = arith.constant 2 : index
    %c0_18 = arith.constant 0 : index
    %31 = vector.load %arg12[%c2, %c0_18] : memref<16x128xf32, #tpu.memory_space<vmem>>, vector<2x128xf32>
    %cst_19 = arith.constant dense<0.000000e+00> : vector<2x128xf32>
    %32 = tpu.matmul %29, %8, %cst_19 {dimension_numbers = #tpu.dot_dimension_numbers<[1], [0], [0], [1], [0, 0, 1, 1], [], []>} : vector<2x32xbf16>, vector<32x128xbf16>, vector<2x128xf32> -> vector<2x128xf32>
    %33 = arith.addf %31, %32 : vector<2x128xf32>
    %34 = math.tanh %33 : vector<2x128xf32>
    %35 = vector.extract_strided_slice %34 {offsets = [0, 0], sizes = [2, 96], strides = [1, 1]} : vector<2x128xf32> to vector<2x96xf32>
    %cst_20 = arith.constant 1.000000e+00 : f32
    %36 = vector.broadcast %cst_20 : f32 to vector<2x96xf32>
    %37 = arith.addf %35, %36 : vector<2x96xf32>
    %cst_21 = arith.constant 5.000000e-01 : f32
    %38 = vector.broadcast %cst_21 : f32 to vector<2x96xf32>
    %39 = arith.mulf %38, %37 : vector<2x96xf32>
    %40 = vector.extract_strided_slice %39 {offsets = [0, 0], sizes = [2, 32], strides = [1, 1]} : vector<2x96xf32> to vector<2x32xf32>
    %41 = vector.extract_strided_slice %39 {offsets = [0, 32], sizes = [2, 32], strides = [1, 1]} : vector<2x96xf32> to vector<2x32xf32>
    %42 = vector.extract_strided_slice %39 {offsets = [0, 64], sizes = [2, 32], strides = [1, 1]} : vector<2x96xf32> to vector<2x32xf32>
    %43 = vector.extract_strided_slice %34 {offsets = [0, 96], sizes = [2, 32], strides = [1, 1]} : vector<2x128xf32> to vector<2x32xf32>
    %44 = arith.mulf %41, %26 : vector<2x32xf32>
    %45 = arith.mulf %40, %43 : vector<2x32xf32>
    %46 = arith.addf %44, %45 : vector<2x32xf32>
    %47 = math.tanh %46 : vector<2x32xf32>
    %48 = arith.mulf %42, %47 : vector<2x32xf32>
    %49 = arith.truncf %48 : vector<2x32xf32> to vector<2x32xbf16>
    %c2_22 = arith.constant 2 : index
    %c0_23 = arith.constant 0 : index
    %50 = vector.load %arg11[%c2_22, %c0_23] : memref<16x32xbf16, #tpu.memory_space<vmem>>, vector<2x32xbf16>
    tpu.vector_store %arg11[%c2_22, %c0_23], %49 {strides = array<i32>} : memref<16x32xbf16, #tpu.memory_space<vmem>>, vector<2x32xbf16>,
    %c4 = arith.constant 4 : index
    %c0_24 = arith.constant 0 : index
    %51 = vector.load %arg12[%c4, %c0_24] : memref<16x128xf32, #tpu.memory_space<vmem>>, vector<2x128xf32>
    %cst_25 = arith.constant dense<0.000000e+00> : vector<2x128xf32>
    %52 = tpu.matmul %49, %8, %cst_25 {dimension_numbers = #tpu.dot_dimension_numbers<[1], [0], [0], [1], [0, 0, 1, 1], [], []>} : vector<2x32xbf16>, vector<32x128xbf16>, vector<2x128xf32> -> vector<2x128xf32>
    %53 = arith.addf %51, %52 : vector<2x128xf32>
    %54 = math.tanh %53 : vector<2x128xf32>
    %55 = vector.extract_strided_slice %54 {offsets = [0, 0], sizes = [2, 96], strides = [1, 1]} : vector<2x128xf32> to vector<2x96xf32>
    %cst_26 = arith.constant 1.000000e+00 : f32
    %56 = vector.broadcast %cst_26 : f32 to vector<2x96xf32>
    %57 = arith.addf %55, %56 : vector<2x96xf32>
    %cst_27 = arith.constant 5.000000e-01 : f32
    %58 = vector.broadcast %cst_27 : f32 to vector<2x96xf32>
    %59 = arith.mulf %58, %57 : vector<2x96xf32>
    %60 = vector.extract_strided_slice %59 {offsets = [0, 0], sizes = [2, 32], strides = [1, 1]} : vector<2x96xf32> to vector<2x32xf32>
    %61 = vector.extract_strided_slice %59 {offsets = [0, 32], sizes = [2, 32], strides = [1, 1]} : vector<2x96xf32> to vector<2x32xf32>
    %62 = vector.extract_strided_slice %59 {offsets = [0, 64], sizes = [2, 32], strides = [1, 1]} : vector<2x96xf32> to vector<2x32xf32>
    %63 = vector.extract_strided_slice %54 {offsets = [0, 96], sizes = [2, 32], strides = [1, 1]} : vector<2x128xf32> to vector<2x32xf32>
    %64 = arith.mulf %61, %46 : vector<2x32xf32>
    %65 = arith.mulf %60, %63 : vector<2x32xf32>
    %66 = arith.addf %64, %65 : vector<2x32xf32>
    %67 = math.tanh %66 : vector<2x32xf32>
    %68 = arith.mulf %62, %67 : vector<2x32xf32>
    %69 = arith.truncf %68 : vector<2x32xf32> to vector<2x32xbf16>
    %c4_28 = arith.constant 4 : index
    %c0_29 = arith.constant 0 : index
    %70 = vector.load %arg11[%c4_28, %c0_29] : memref<16x32xbf16, #tpu.memory_space<vmem>>, vector<2x32xbf16>
    tpu.vector_store %arg11[%c4_28, %c0_29], %69 {strides = array<i32>} : memref<16x32xbf16, #tpu.memory_space<vmem>>, vector<2x32xbf16>,
    %c6 = arith.constant 6 : index
    %c0_30 = arith.constant 0 : index
    %71 = vector.load %arg12[%c6, %c0_30] : memref<16x128xf32, #tpu.memory_space<vmem>>, vector<2x128xf32>
    %cst_31 = arith.constant dense<0.000000e+00> : vector<2x128xf32>
    %72 = tpu.matmul %69, %8, %cst_31 {dimension_numbers = #tpu.dot_dimension_numbers<[1], [0], [0], [1], [0, 0, 1, 1], [], []>} : vector<2x32xbf16>, vector<32x128xbf16>, vector<2x128xf32> -> vector<2x128xf32>
    %73 = arith.addf %71, %72 : vector<2x128xf32>
    %74 = math.tanh %73 : vector<2x128xf32>
    %75 = vector.extract_strided_slice %74 {offsets = [0, 0], sizes = [2, 96], strides = [1, 1]} : vector<2x128xf32> to vector<2x96xf32>
    %cst_32 = arith.constant 1.000000e+00 : f32
    %76 = vector.broadcast %cst_32 : f32 to vector<2x96xf32>
    %77 = arith.addf %75, %76 : vector<2x96xf32>
    %cst_33 = arith.constant 5.000000e-01 : f32
    %78 = vector.broadcast %cst_33 : f32 to vector<2x96xf32>
    %79 = arith.mulf %78, %77 : vector<2x96xf32>
    %80 = vector.extract_strided_slice %79 {offsets = [0, 0], sizes = [2, 32], strides = [1, 1]} : vector<2x96xf32> to vector<2x32xf32>
    %81 = vector.extract_strided_slice %79 {offsets = [0, 32], sizes = [2, 32], strides = [1, 1]} : vector<2x96xf32> to vector<2x32xf32>
    %82 = vector.extract_strided_slice %79 {offsets = [0, 64], sizes = [2, 32], strides = [1, 1]} : vector<2x96xf32> to vector<2x32xf32>
    %83 = vector.extract_strided_slice %74 {offsets = [0, 96], sizes = [2, 32], strides = [1, 1]} : vector<2x128xf32> to vector<2x32xf32>
    %84 = arith.mulf %81, %66 : vector<2x32xf32>
    %85 = arith.mulf %80, %83 : vector<2x32xf32>
    %86 = arith.addf %84, %85 : vector<2x32xf32>
    %87 = math.tanh %86 : vector<2x32xf32>
    %88 = arith.mulf %82, %87 : vector<2x32xf32>
    %89 = arith.truncf %88 : vector<2x32xf32> to vector<2x32xbf16>
    %c6_34 = arith.constant 6 : index
    %c0_35 = arith.constant 0 : index
    %90 = vector.load %arg11[%c6_34, %c0_35] : memref<16x32xbf16, #tpu.memory_space<vmem>>, vector<2x32xbf16>
    tpu.vector_store %arg11[%c6_34, %c0_35], %89 {strides = array<i32>} : memref<16x32xbf16, #tpu.memory_space<vmem>>, vector<2x32xbf16>,
    %c8 = arith.constant 8 : index
    %c0_36 = arith.constant 0 : index
    %91 = vector.load %arg12[%c8, %c0_36] : memref<16x128xf32, #tpu.memory_space<vmem>>, vector<2x128xf32>
    %cst_37 = arith.constant dense<0.000000e+00> : vector<2x128xf32>
    %92 = tpu.matmul %89, %8, %cst_37 {dimension_numbers = #tpu.dot_dimension_numbers<[1], [0], [0], [1], [0, 0, 1, 1], [], []>} : vector<2x32xbf16>, vector<32x128xbf16>, vector<2x128xf32> -> vector<2x128xf32>
    %93 = arith.addf %91, %92 : vector<2x128xf32>
    %94 = math.tanh %93 : vector<2x128xf32>
    %95 = vector.extract_strided_slice %94 {offsets = [0, 0], sizes = [2, 96], strides = [1, 1]} : vector<2x128xf32> to vector<2x96xf32>
    %cst_38 = arith.constant 1.000000e+00 : f32
    %96 = vector.broadcast %cst_38 : f32 to vector<2x96xf32>
    %97 = arith.addf %95, %96 : vector<2x96xf32>
    %cst_39 = arith.constant 5.000000e-01 : f32
    %98 = vector.broadcast %cst_39 : f32 to vector<2x96xf32>
    %99 = arith.mulf %98, %97 : vector<2x96xf32>
    %100 = vector.extract_strided_slice %99 {offsets = [0, 0], sizes = [2, 32], strides = [1, 1]} : vector<2x96xf32> to vector<2x32xf32>
    %101 = vector.extract_strided_slice %99 {offsets = [0, 32], sizes = [2, 32], strides = [1, 1]} : vector<2x96xf32> to vector<2x32xf32>
    %102 = vector.extract_strided_slice %99 {offsets = [0, 64], sizes = [2, 32], strides = [1, 1]} : vector<2x96xf32> to vector<2x32xf32>
    %103 = vector.extract_strided_slice %94 {offsets = [0, 96], sizes = [2, 32], strides = [1, 1]} : vector<2x128xf32> to vector<2x32xf32>
    %104 = arith.mulf %101, %86 : vector<2x32xf32>
    %105 = arith.mulf %100, %103 : vector<2x32xf32>
    %106 = arith.addf %104, %105 : vector<2x32xf32>
    %107 = math.tanh %106 : vector<2x32xf32>
    %108 = arith.mulf %102, %107 : vector<2x32xf32>
    %109 = arith.truncf %108 : vector<2x32xf32> to vector<2x32xbf16>
    %c8_40 = arith.constant 8 : index
    %c0_41 = arith.constant 0 : index
    %110 = vector.load %arg11[%c8_40, %c0_41] : memref<16x32xbf16, #tpu.memory_space<vmem>>, vector<2x32xbf16>
    tpu.vector_store %arg11[%c8_40, %c0_41], %109 {strides = array<i32>} : memref<16x32xbf16, #tpu.memory_space<vmem>>, vector<2x32xbf16>,
    %c10 = arith.constant 10 : index
    %c0_42 = arith.constant 0 : index
    %111 = vector.load %arg12[%c10, %c0_42] : memref<16x128xf32, #tpu.memory_space<vmem>>, vector<2x128xf32>
    %cst_43 = arith.constant dense<0.000000e+00> : vector<2x128xf32>
    %112 = tpu.matmul %109, %8, %cst_43 {dimension_numbers = #tpu.dot_dimension_numbers<[1], [0], [0], [1], [0, 0, 1, 1], [], []>} : vector<2x32xbf16>, vector<32x128xbf16>, vector<2x128xf32> -> vector<2x128xf32>
    %113 = arith.addf %111, %112 : vector<2x128xf32>
    %114 = math.tanh %113 : vector<2x128xf32>
    %115 = vector.extract_strided_slice %114 {offsets = [0, 0], sizes = [2, 96], strides = [1, 1]} : vector<2x128xf32> to vector<2x96xf32>
    %cst_44 = arith.constant 1.000000e+00 : f32
    %116 = vector.broadcast %cst_44 : f32 to vector<2x96xf32>
    %117 = arith.addf %115, %116 : vector<2x96xf32>
    %cst_45 = arith.constant 5.000000e-01 : f32
    %118 = vector.broadcast %cst_45 : f32 to vector<2x96xf32>
    %119 = arith.mulf %118, %117 : vector<2x96xf32>
    %120 = vector.extract_strided_slice %119 {offsets = [0, 0], sizes = [2, 32], strides = [1, 1]} : vector<2x96xf32> to vector<2x32xf32>
    %121 = vector.extract_strided_slice %119 {offsets = [0, 32], sizes = [2, 32], strides = [1, 1]} : vector<2x96xf32> to vector<2x32xf32>
    %122 = vector.extract_strided_slice %119 {offsets = [0, 64], sizes = [2, 32], strides = [1, 1]} : vector<2x96xf32> to vector<2x32xf32>
    %123 = vector.extract_strided_slice %114 {offsets = [0, 96], sizes = [2, 32], strides = [1, 1]} : vector<2x128xf32> to vector<2x32xf32>
    %124 = arith.mulf %121, %106 : vector<2x32xf32>
    %125 = arith.mulf %120, %123 : vector<2x32xf32>
    %126 = arith.addf %124, %125 : vector<2x32xf32>
    %127 = math.tanh %126 : vector<2x32xf32>
    %128 = arith.mulf %122, %127 : vector<2x32xf32>
    %129 = arith.truncf %128 : vector<2x32xf32> to vector<2x32xbf16>
    %c10_46 = arith.constant 10 : index
    %c0_47 = arith.constant 0 : index
    %130 = vector.load %arg11[%c10_46, %c0_47] : memref<16x32xbf16, #tpu.memory_space<vmem>>, vector<2x32xbf16>
    tpu.vector_store %arg11[%c10_46, %c0_47], %129 {strides = array<i32>} : memref<16x32xbf16, #tpu.memory_space<vmem>>, vector<2x32xbf16>,
    %c12 = arith.constant 12 : index
    %c0_48 = arith.constant 0 : index
    %131 = vector.load %arg12[%c12, %c0_48] : memref<16x128xf32, #tpu.memory_space<vmem>>, vector<2x128xf32>
    %cst_49 = arith.constant dense<0.000000e+00> : vector<2x128xf32>
    %132 = tpu.matmul %129, %8, %cst_49 {dimension_numbers = #tpu.dot_dimension_numbers<[1], [0], [0], [1], [0, 0, 1, 1], [], []>} : vector<2x32xbf16>, vector<32x128xbf16>, vector<2x128xf32> -> vector<2x128xf32>
    %133 = arith.addf %131, %132 : vector<2x128xf32>
    %134 = math.tanh %133 : vector<2x128xf32>
    %135 = vector.extract_strided_slice %134 {offsets = [0, 0], sizes = [2, 96], strides = [1, 1]} : vector<2x128xf32> to vector<2x96xf32>
    %cst_50 = arith.constant 1.000000e+00 : f32
    %136 = vector.broadcast %cst_50 : f32 to vector<2x96xf32>
    %137 = arith.addf %135, %136 : vector<2x96xf32>
    %cst_51 = arith.constant 5.000000e-01 : f32
    %138 = vector.broadcast %cst_51 : f32 to vector<2x96xf32>
    %139 = arith.mulf %138, %137 : vector<2x96xf32>
    %140 = vector.extract_strided_slice %139 {offsets = [0, 0], sizes = [2, 32], strides = [1, 1]} : vector<2x96xf32> to vector<2x32xf32>
    %141 = vector.extract_strided_slice %139 {offsets = [0, 32], sizes = [2, 32], strides = [1, 1]} : vector<2x96xf32> to vector<2x32xf32>
    %142 = vector.extract_strided_slice %139 {offsets = [0, 64], sizes = [2, 32], strides = [1, 1]} : vector<2x96xf32> to vector<2x32xf32>
    %143 = vector.extract_strided_slice %134 {offsets = [0, 96], sizes = [2, 32], strides = [1, 1]} : vector<2x128xf32> to vector<2x32xf32>
    %144 = arith.mulf %141, %126 : vector<2x32xf32>
    %145 = arith.mulf %140, %143 : vector<2x32xf32>
    %146 = arith.addf %144, %145 : vector<2x32xf32>
    %147 = math.tanh %146 : vector<2x32xf32>
    %148 = arith.mulf %142, %147 : vector<2x32xf32>
    %149 = arith.truncf %148 : vector<2x32xf32> to vector<2x32xbf16>
    %c12_52 = arith.constant 12 : index
    %c0_53 = arith.constant 0 : index
    %150 = vector.load %arg11[%c12_52, %c0_53] : memref<16x32xbf16, #tpu.memory_space<vmem>>, vector<2x32xbf16>
    tpu.vector_store %arg11[%c12_52, %c0_53], %149 {strides = array<i32>} : memref<16x32xbf16, #tpu.memory_space<vmem>>, vector<2x32xbf16>,
    %c14 = arith.constant 14 : index
    %c0_54 = arith.constant 0 : index
    %151 = vector.load %arg12[%c14, %c0_54] : memref<16x128xf32, #tpu.memory_space<vmem>>, vector<2x128xf32>
    %cst_55 = arith.constant dense<0.000000e+00> : vector<2x128xf32>
    %152 = tpu.matmul %149, %8, %cst_55 {dimension_numbers = #tpu.dot_dimension_numbers<[1], [0], [0], [1], [0, 0, 1, 1], [], []>} : vector<2x32xbf16>, vector<32x128xbf16>, vector<2x128xf32> -> vector<2x128xf32>
    %153 = arith.addf %151, %152 : vector<2x128xf32>
    %154 = math.tanh %153 : vector<2x128xf32>
    %155 = vector.extract_strided_slice %154 {offsets = [0, 0], sizes = [2, 96], strides = [1, 1]} : vector<2x128xf32> to vector<2x96xf32>
    %cst_56 = arith.constant 1.000000e+00 : f32
    %156 = vector.broadcast %cst_56 : f32 to vector<2x96xf32>
    %157 = arith.addf %155, %156 : vector<2x96xf32>
    %cst_57 = arith.constant 5.000000e-01 : f32
    %158 = vector.broadcast %cst_57 : f32 to vector<2x96xf32>
    %159 = arith.mulf %158, %157 : vector<2x96xf32>
    %160 = vector.extract_strided_slice %159 {offsets = [0, 0], sizes = [2, 32], strides = [1, 1]} : vector<2x96xf32> to vector<2x32xf32>
    %161 = vector.extract_strided_slice %159 {offsets = [0, 32], sizes = [2, 32], strides = [1, 1]} : vector<2x96xf32> to vector<2x32xf32>
    %162 = vector.extract_strided_slice %159 {offsets = [0, 64], sizes = [2, 32], strides = [1, 1]} : vector<2x96xf32> to vector<2x32xf32>
    %163 = vector.extract_strided_slice %154 {offsets = [0, 96], sizes = [2, 32], strides = [1, 1]} : vector<2x128xf32> to vector<2x32xf32>
    %164 = arith.mulf %161, %146 : vector<2x32xf32>
    %165 = arith.mulf %160, %163 : vector<2x32xf32>
    %166 = arith.addf %164, %165 : vector<2x32xf32>
    %167 = math.tanh %166 : vector<2x32xf32>
    %168 = arith.mulf %162, %167 : vector<2x32xf32>
    %169 = arith.truncf %168 : vector<2x32xf32> to vector<2x32xbf16>
    %c14_58 = arith.constant 14 : index
    %c0_59 = arith.constant 0 : index
    %170 = vector.load %arg11[%c14_58, %c0_59] : memref<16x32xbf16, #tpu.memory_space<vmem>>, vector<2x32xbf16>
    tpu.vector_store %arg11[%c14_58, %c0_59], %169 {strides = array<i32>} : memref<16x32xbf16, #tpu.memory_space<vmem>>, vector<2x32xbf16>,
    %c0_60 = arith.constant 0 : index
    %c0_61 = arith.constant 0 : index
    %171 = vector.load %arg11[%c0_60, %c0_61] : memref<16x32xbf16, #tpu.memory_space<vmem>>, vector<16x32xbf16>
    %c0_62 = arith.constant 0 : index
    %c0_63 = arith.constant 0 : index
    %172 = vector.load %arg5[%c0_62, %c0_63] : memref<32x128xbf16, #tpu.memory_space<vmem>>, vector<32x128xbf16>
    %cst_64 = arith.constant dense<0.000000e+00> : vector<16x128xf32>
    %173 = tpu.matmul %171, %172, %cst_64 {dimension_numbers = #tpu.dot_dimension_numbers<[1], [0], [0], [1], [0, 0, 1, 1], [], []>} : vector<16x32xbf16>, vector<32x128xbf16>, vector<16x128xf32> -> vector<16x128xf32>
    %c0_65 = arith.constant 0 : index
    %c0_66 = arith.constant 0 : index
    %174 = vector.load %arg7[%c0_65, %c0_66] : memref<1x128xf32, #tpu.memory_space<vmem>>, vector<1x128xf32>
    %175 = vector.broadcast %174 : vector<1x128xf32> to vector<16x128xf32>
    %176 = arith.addf %173, %175 : vector<16x128xf32>
    %c0_67 = arith.constant 0 : index
    %c0_68 = arith.constant 0 : index
    %177 = vector.load %arg12[%c0_67, %c0_68] : memref<16x128xf32, #tpu.memory_space<vmem>>, vector<16x128xf32>
    tpu.vector_store %arg12[%c0_67, %c0_68], %176 {strides = array<i32>} : memref<16x128xf32, #tpu.memory_space<vmem>>, vector<16x128xf32>,
    %c0_69 = arith.constant 0 : index
    %c0_70 = arith.constant 0 : index
    %178 = vector.load %arg6[%c0_69, %c0_70] : memref<32x128xbf16, #tpu.memory_space<vmem>>, vector<32x128xbf16>
    %cst_71 = arith.constant 0.000000e+00 : bf16
    %179 = vector.broadcast %cst_71 : bf16 to vector<2x32xbf16>
    %cst_72 = arith.constant 0.000000e+00 : f32
    %180 = vector.broadcast %cst_72 : f32 to vector<2x32xf32>
    %c0_73 = arith.constant 0 : index
    %c0_74 = arith.constant 0 : index
    %181 = vector.load %arg12[%c0_73, %c0_74] : memref<16x128xf32, #tpu.memory_space<vmem>>, vector<2x128xf32>
    %cst_75 = arith.constant dense<0.000000e+00> : vector<2x128xf32>
    %182 = tpu.matmul %179, %178, %cst_75 {dimension_numbers = #tpu.dot_dimension_numbers<[1], [0], [0], [1], [0, 0, 1, 1], [], []>} : vector<2x32xbf16>, vector<32x128xbf16>, vector<2x128xf32> -> vector<2x128xf32>
    %183 = arith.addf %181, %182 : vector<2x128xf32>
    %184 = math.tanh %183 : vector<2x128xf32>
    %185 = vector.extract_strided_slice %184 {offsets = [0, 0], sizes = [2, 96], strides = [1, 1]} : vector<2x128xf32> to vector<2x96xf32>
    %cst_76 = arith.constant 1.000000e+00 : f32
    %186 = vector.broadcast %cst_76 : f32 to vector<2x96xf32>
    %187 = arith.addf %185, %186 : vector<2x96xf32>
    %cst_77 = arith.constant 5.000000e-01 : f32
    %188 = vector.broadcast %cst_77 : f32 to vector<2x96xf32>
    %189 = arith.mulf %188, %187 : vector<2x96xf32>
    %190 = vector.extract_strided_slice %189 {offsets = [0, 0], sizes = [2, 32], strides = [1, 1]} : vector<2x96xf32> to vector<2x32xf32>
    %191 = vector.extract_strided_slice %189 {offsets = [0, 32], sizes = [2, 32], strides = [1, 1]} : vector<2x96xf32> to vector<2x32xf32>
    %192 = vector.extract_strided_slice %189 {offsets = [0, 64], sizes = [2, 32], strides = [1, 1]} : vector<2x96xf32> to vector<2x32xf32>
    %193 = vector.extract_strided_slice %184 {offsets = [0, 96], sizes = [2, 32], strides = [1, 1]} : vector<2x128xf32> to vector<2x32xf32>
    %194 = arith.mulf %191, %180 : vector<2x32xf32>
    %195 = arith.mulf %190, %193 : vector<2x32xf32>
    %196 = arith.addf %194, %195 : vector<2x32xf32>
    %197 = math.tanh %196 : vector<2x32xf32>
    %198 = arith.mulf %192, %197 : vector<2x32xf32>
    %199 = arith.truncf %198 : vector<2x32xf32> to vector<2x32xbf16>
    %c0_78 = arith.constant 0 : index
    %c0_79 = arith.constant 0 : index
    %200 = vector.load %arg11[%c0_78, %c0_79] : memref<16x32xbf16, #tpu.memory_space<vmem>>, vector<2x32xbf16>
    tpu.vector_store %arg11[%c0_78, %c0_79], %199 {strides = array<i32>} : memref<16x32xbf16, #tpu.memory_space<vmem>>, vector<2x32xbf16>,
    %c2_80 = arith.constant 2 : index
    %c0_81 = arith.constant 0 : index
    %201 = vector.load %arg12[%c2_80, %c0_81] : memref<16x128xf32, #tpu.memory_space<vmem>>, vector<2x128xf32>
    %cst_82 = arith.constant dense<0.000000e+00> : vector<2x128xf32>
    %202 = tpu.matmul %199, %178, %cst_82 {dimension_numbers = #tpu.dot_dimension_numbers<[1], [0], [0], [1], [0, 0, 1, 1], [], []>} : vector<2x32xbf16>, vector<32x128xbf16>, vector<2x128xf32> -> vector<2x128xf32>
    %203 = arith.addf %201, %202 : vector<2x128xf32>
    %204 = math.tanh %203 : vector<2x128xf32>
    %205 = vector.extract_strided_slice %204 {offsets = [0, 0], sizes = [2, 96], strides = [1, 1]} : vector<2x128xf32> to vector<2x96xf32>
    %cst_83 = arith.constant 1.000000e+00 : f32
    %206 = vector.broadcast %cst_83 : f32 to vector<2x96xf32>
    %207 = arith.addf %205, %206 : vector<2x96xf32>
    %cst_84 = arith.constant 5.000000e-01 : f32
    %208 = vector.broadcast %cst_84 : f32 to vector<2x96xf32>
    %209 = arith.mulf %208, %207 : vector<2x96xf32>
    %210 = vector.extract_strided_slice %209 {offsets = [0, 0], sizes = [2, 32], strides = [1, 1]} : vector<2x96xf32> to vector<2x32xf32>
    %211 = vector.extract_strided_slice %209 {offsets = [0, 32], sizes = [2, 32], strides = [1, 1]} : vector<2x96xf32> to vector<2x32xf32>
    %212 = vector.extract_strided_slice %209 {offsets = [0, 64], sizes = [2, 32], strides = [1, 1]} : vector<2x96xf32> to vector<2x32xf32>
    %213 = vector.extract_strided_slice %204 {offsets = [0, 96], sizes = [2, 32], strides = [1, 1]} : vector<2x128xf32> to vector<2x32xf32>
    %214 = arith.mulf %211, %196 : vector<2x32xf32>
    %215 = arith.mulf %210, %213 : vector<2x32xf32>
    %216 = arith.addf %214, %215 : vector<2x32xf32>
    %217 = math.tanh %216 : vector<2x32xf32>
    %218 = arith.mulf %212, %217 : vector<2x32xf32>
    %219 = arith.truncf %218 : vector<2x32xf32> to vector<2x32xbf16>
    %c2_85 = arith.constant 2 : index
    %c0_86 = arith.constant 0 : index
    %220 = vector.load %arg11[%c2_85, %c0_86] : memref<16x32xbf16, #tpu.memory_space<vmem>>, vector<2x32xbf16>
    tpu.vector_store %arg11[%c2_85, %c0_86], %219 {strides = array<i32>} : memref<16x32xbf16, #tpu.memory_space<vmem>>, vector<2x32xbf16>,
    %c4_87 = arith.constant 4 : index
    %c0_88 = arith.constant 0 : index
    %221 = vector.load %arg12[%c4_87, %c0_88] : memref<16x128xf32, #tpu.memory_space<vmem>>, vector<2x128xf32>
    %cst_89 = arith.constant dense<0.000000e+00> : vector<2x128xf32>
    %222 = tpu.matmul %219, %178, %cst_89 {dimension_numbers = #tpu.dot_dimension_numbers<[1], [0], [0], [1], [0, 0, 1, 1], [], []>} : vector<2x32xbf16>, vector<32x128xbf16>, vector<2x128xf32> -> vector<2x128xf32>
    %223 = arith.addf %221, %222 : vector<2x128xf32>
    %224 = math.tanh %223 : vector<2x128xf32>
    %225 = vector.extract_strided_slice %224 {offsets = [0, 0], sizes = [2, 96], strides = [1, 1]} : vector<2x128xf32> to vector<2x96xf32>
    %cst_90 = arith.constant 1.000000e+00 : f32
    %226 = vector.broadcast %cst_90 : f32 to vector<2x96xf32>
    %227 = arith.addf %225, %226 : vector<2x96xf32>
    %cst_91 = arith.constant 5.000000e-01 : f32
    %228 = vector.broadcast %cst_91 : f32 to vector<2x96xf32>
    %229 = arith.mulf %228, %227 : vector<2x96xf32>
    %230 = vector.extract_strided_slice %229 {offsets = [0, 0], sizes = [2, 32], strides = [1, 1]} : vector<2x96xf32> to vector<2x32xf32>
    %231 = vector.extract_strided_slice %229 {offsets = [0, 32], sizes = [2, 32], strides = [1, 1]} : vector<2x96xf32> to vector<2x32xf32>
    %232 = vector.extract_strided_slice %229 {offsets = [0, 64], sizes = [2, 32], strides = [1, 1]} : vector<2x96xf32> to vector<2x32xf32>
    %233 = vector.extract_strided_slice %224 {offsets = [0, 96], sizes = [2, 32], strides = [1, 1]} : vector<2x128xf32> to vector<2x32xf32>
    %234 = arith.mulf %231, %216 : vector<2x32xf32>
    %235 = arith.mulf %230, %233 : vector<2x32xf32>
    %236 = arith.addf %234, %235 : vector<2x32xf32>
    %237 = math.tanh %236 : vector<2x32xf32>
    %238 = arith.mulf %232, %237 : vector<2x32xf32>
    %239 = arith.truncf %238 : vector<2x32xf32> to vector<2x32xbf16>
    %c4_92 = arith.constant 4 : index
    %c0_93 = arith.constant 0 : index
    %240 = vector.load %arg11[%c4_92, %c0_93] : memref<16x32xbf16, #tpu.memory_space<vmem>>, vector<2x32xbf16>
    tpu.vector_store %arg11[%c4_92, %c0_93], %239 {strides = array<i32>} : memref<16x32xbf16, #tpu.memory_space<vmem>>, vector<2x32xbf16>,
    %c6_94 = arith.constant 6 : index
    %c0_95 = arith.constant 0 : index
    %241 = vector.load %arg12[%c6_94, %c0_95] : memref<16x128xf32, #tpu.memory_space<vmem>>, vector<2x128xf32>
    %cst_96 = arith.constant dense<0.000000e+00> : vector<2x128xf32>
    %242 = tpu.matmul %239, %178, %cst_96 {dimension_numbers = #tpu.dot_dimension_numbers<[1], [0], [0], [1], [0, 0, 1, 1], [], []>} : vector<2x32xbf16>, vector<32x128xbf16>, vector<2x128xf32> -> vector<2x128xf32>
    %243 = arith.addf %241, %242 : vector<2x128xf32>
    %244 = math.tanh %243 : vector<2x128xf32>
    %245 = vector.extract_strided_slice %244 {offsets = [0, 0], sizes = [2, 96], strides = [1, 1]} : vector<2x128xf32> to vector<2x96xf32>
    %cst_97 = arith.constant 1.000000e+00 : f32
    %246 = vector.broadcast %cst_97 : f32 to vector<2x96xf32>
    %247 = arith.addf %245, %246 : vector<2x96xf32>
    %cst_98 = arith.constant 5.000000e-01 : f32
    %248 = vector.broadcast %cst_98 : f32 to vector<2x96xf32>
    %249 = arith.mulf %248, %247 : vector<2x96xf32>
    %250 = vector.extract_strided_slice %249 {offsets = [0, 0], sizes = [2, 32], strides = [1, 1]} : vector<2x96xf32> to vector<2x32xf32>
    %251 = vector.extract_strided_slice %249 {offsets = [0, 32], sizes = [2, 32], strides = [1, 1]} : vector<2x96xf32> to vector<2x32xf32>
    %252 = vector.extract_strided_slice %249 {offsets = [0, 64], sizes = [2, 32], strides = [1, 1]} : vector<2x96xf32> to vector<2x32xf32>
    %253 = vector.extract_strided_slice %244 {offsets = [0, 96], sizes = [2, 32], strides = [1, 1]} : vector<2x128xf32> to vector<2x32xf32>
    %254 = arith.mulf %251, %236 : vector<2x32xf32>
    %255 = arith.mulf %250, %253 : vector<2x32xf32>
    %256 = arith.addf %254, %255 : vector<2x32xf32>
    %257 = math.tanh %256 : vector<2x32xf32>
    %258 = arith.mulf %252, %257 : vector<2x32xf32>
    %259 = arith.truncf %258 : vector<2x32xf32> to vector<2x32xbf16>
    %c6_99 = arith.constant 6 : index
    %c0_100 = arith.constant 0 : index
    %260 = vector.load %arg11[%c6_99, %c0_100] : memref<16x32xbf16, #tpu.memory_space<vmem>>, vector<2x32xbf16>
    tpu.vector_store %arg11[%c6_99, %c0_100], %259 {strides = array<i32>} : memref<16x32xbf16, #tpu.memory_space<vmem>>, vector<2x32xbf16>,
    %c8_101 = arith.constant 8 : index
    %c0_102 = arith.constant 0 : index
    %261 = vector.load %arg12[%c8_101, %c0_102] : memref<16x128xf32, #tpu.memory_space<vmem>>, vector<2x128xf32>
    %cst_103 = arith.constant dense<0.000000e+00> : vector<2x128xf32>
    %262 = tpu.matmul %259, %178, %cst_103 {dimension_numbers = #tpu.dot_dimension_numbers<[1], [0], [0], [1], [0, 0, 1, 1], [], []>} : vector<2x32xbf16>, vector<32x128xbf16>, vector<2x128xf32> -> vector<2x128xf32>
    %263 = arith.addf %261, %262 : vector<2x128xf32>
    %264 = math.tanh %263 : vector<2x128xf32>
    %265 = vector.extract_strided_slice %264 {offsets = [0, 0], sizes = [2, 96], strides = [1, 1]} : vector<2x128xf32> to vector<2x96xf32>
    %cst_104 = arith.constant 1.000000e+00 : f32
    %266 = vector.broadcast %cst_104 : f32 to vector<2x96xf32>
    %267 = arith.addf %265, %266 : vector<2x96xf32>
    %cst_105 = arith.constant 5.000000e-01 : f32
    %268 = vector.broadcast %cst_105 : f32 to vector<2x96xf32>
    %269 = arith.mulf %268, %267 : vector<2x96xf32>
    %270 = vector.extract_strided_slice %269 {offsets = [0, 0], sizes = [2, 32], strides = [1, 1]} : vector<2x96xf32> to vector<2x32xf32>
    %271 = vector.extract_strided_slice %269 {offsets = [0, 32], sizes = [2, 32], strides = [1, 1]} : vector<2x96xf32> to vector<2x32xf32>
    %272 = vector.extract_strided_slice %269 {offsets = [0, 64], sizes = [2, 32], strides = [1, 1]} : vector<2x96xf32> to vector<2x32xf32>
    %273 = vector.extract_strided_slice %264 {offsets = [0, 96], sizes = [2, 32], strides = [1, 1]} : vector<2x128xf32> to vector<2x32xf32>
    %274 = arith.mulf %271, %256 : vector<2x32xf32>
    %275 = arith.mulf %270, %273 : vector<2x32xf32>
    %276 = arith.addf %274, %275 : vector<2x32xf32>
    %277 = math.tanh %276 : vector<2x32xf32>
    %278 = arith.mulf %272, %277 : vector<2x32xf32>
    %279 = arith.truncf %278 : vector<2x32xf32> to vector<2x32xbf16>
    %c8_106 = arith.constant 8 : index
    %c0_107 = arith.constant 0 : index
    %280 = vector.load %arg11[%c8_106, %c0_107] : memref<16x32xbf16, #tpu.memory_space<vmem>>, vector<2x32xbf16>
    tpu.vector_store %arg11[%c8_106, %c0_107], %279 {strides = array<i32>} : memref<16x32xbf16, #tpu.memory_space<vmem>>, vector<2x32xbf16>,
    %c10_108 = arith.constant 10 : index
    %c0_109 = arith.constant 0 : index
    %281 = vector.load %arg12[%c10_108, %c0_109] : memref<16x128xf32, #tpu.memory_space<vmem>>, vector<2x128xf32>
    %cst_110 = arith.constant dense<0.000000e+00> : vector<2x128xf32>
    %282 = tpu.matmul %279, %178, %cst_110 {dimension_numbers = #tpu.dot_dimension_numbers<[1], [0], [0], [1], [0, 0, 1, 1], [], []>} : vector<2x32xbf16>, vector<32x128xbf16>, vector<2x128xf32> -> vector<2x128xf32>
    %283 = arith.addf %281, %282 : vector<2x128xf32>
    %284 = math.tanh %283 : vector<2x128xf32>
    %285 = vector.extract_strided_slice %284 {offsets = [0, 0], sizes = [2, 96], strides = [1, 1]} : vector<2x128xf32> to vector<2x96xf32>
    %cst_111 = arith.constant 1.000000e+00 : f32
    %286 = vector.broadcast %cst_111 : f32 to vector<2x96xf32>
    %287 = arith.addf %285, %286 : vector<2x96xf32>
    %cst_112 = arith.constant 5.000000e-01 : f32
    %288 = vector.broadcast %cst_112 : f32 to vector<2x96xf32>
    %289 = arith.mulf %288, %287 : vector<2x96xf32>
    %290 = vector.extract_strided_slice %289 {offsets = [0, 0], sizes = [2, 32], strides = [1, 1]} : vector<2x96xf32> to vector<2x32xf32>
    %291 = vector.extract_strided_slice %289 {offsets = [0, 32], sizes = [2, 32], strides = [1, 1]} : vector<2x96xf32> to vector<2x32xf32>
    %292 = vector.extract_strided_slice %289 {offsets = [0, 64], sizes = [2, 32], strides = [1, 1]} : vector<2x96xf32> to vector<2x32xf32>
    %293 = vector.extract_strided_slice %284 {offsets = [0, 96], sizes = [2, 32], strides = [1, 1]} : vector<2x128xf32> to vector<2x32xf32>
    %294 = arith.mulf %291, %276 : vector<2x32xf32>
    %295 = arith.mulf %290, %293 : vector<2x32xf32>
    %296 = arith.addf %294, %295 : vector<2x32xf32>
    %297 = math.tanh %296 : vector<2x32xf32>
    %298 = arith.mulf %292, %297 : vector<2x32xf32>
    %299 = arith.truncf %298 : vector<2x32xf32> to vector<2x32xbf16>
    %c10_113 = arith.constant 10 : index
    %c0_114 = arith.constant 0 : index
    %300 = vector.load %arg11[%c10_113, %c0_114] : memref<16x32xbf16, #tpu.memory_space<vmem>>, vector<2x32xbf16>
    tpu.vector_store %arg11[%c10_113, %c0_114], %299 {strides = array<i32>} : memref<16x32xbf16, #tpu.memory_space<vmem>>, vector<2x32xbf16>,
    %c12_115 = arith.constant 12 : index
    %c0_116 = arith.constant 0 : index
    %301 = vector.load %arg12[%c12_115, %c0_116] : memref<16x128xf32, #tpu.memory_space<vmem>>, vector<2x128xf32>
    %cst_117 = arith.constant dense<0.000000e+00> : vector<2x128xf32>
    %302 = tpu.matmul %299, %178, %cst_117 {dimension_numbers = #tpu.dot_dimension_numbers<[1], [0], [0], [1], [0, 0, 1, 1], [], []>} : vector<2x32xbf16>, vector<32x128xbf16>, vector<2x128xf32> -> vector<2x128xf32>
    %303 = arith.addf %301, %302 : vector<2x128xf32>
    %304 = math.tanh %303 : vector<2x128xf32>
    %305 = vector.extract_strided_slice %304 {offsets = [0, 0], sizes = [2, 96], strides = [1, 1]} : vector<2x128xf32> to vector<2x96xf32>
    %cst_118 = arith.constant 1.000000e+00 : f32
    %306 = vector.broadcast %cst_118 : f32 to vector<2x96xf32>
    %307 = arith.addf %305, %306 : vector<2x96xf32>
    %cst_119 = arith.constant 5.000000e-01 : f32
    %308 = vector.broadcast %cst_119 : f32 to vector<2x96xf32>
    %309 = arith.mulf %308, %307 : vector<2x96xf32>
    %310 = vector.extract_strided_slice %309 {offsets = [0, 0], sizes = [2, 32], strides = [1, 1]} : vector<2x96xf32> to vector<2x32xf32>
    %311 = vector.extract_strided_slice %309 {offsets = [0, 32], sizes = [2, 32], strides = [1, 1]} : vector<2x96xf32> to vector<2x32xf32>
    %312 = vector.extract_strided_slice %309 {offsets = [0, 64], sizes = [2, 32], strides = [1, 1]} : vector<2x96xf32> to vector<2x32xf32>
    %313 = vector.extract_strided_slice %304 {offsets = [0, 96], sizes = [2, 32], strides = [1, 1]} : vector<2x128xf32> to vector<2x32xf32>
    %314 = arith.mulf %311, %296 : vector<2x32xf32>
    %315 = arith.mulf %310, %313 : vector<2x32xf32>
    %316 = arith.addf %314, %315 : vector<2x32xf32>
    %317 = math.tanh %316 : vector<2x32xf32>
    %318 = arith.mulf %312, %317 : vector<2x32xf32>
    %319 = arith.truncf %318 : vector<2x32xf32> to vector<2x32xbf16>
    %c12_120 = arith.constant 12 : index
    %c0_121 = arith.constant 0 : index
    %320 = vector.load %arg11[%c12_120, %c0_121] : memref<16x32xbf16, #tpu.memory_space<vmem>>, vector<2x32xbf16>
    tpu.vector_store %arg11[%c12_120, %c0_121], %319 {strides = array<i32>} : memref<16x32xbf16, #tpu.memory_space<vmem>>, vector<2x32xbf16>,
    %c14_122 = arith.constant 14 : index
    %c0_123 = arith.constant 0 : index
    %321 = vector.load %arg12[%c14_122, %c0_123] : memref<16x128xf32, #tpu.memory_space<vmem>>, vector<2x128xf32>
    %cst_124 = arith.constant dense<0.000000e+00> : vector<2x128xf32>
    %322 = tpu.matmul %319, %178, %cst_124 {dimension_numbers = #tpu.dot_dimension_numbers<[1], [0], [0], [1], [0, 0, 1, 1], [], []>} : vector<2x32xbf16>, vector<32x128xbf16>, vector<2x128xf32> -> vector<2x128xf32>
    %323 = arith.addf %321, %322 : vector<2x128xf32>
    %324 = math.tanh %323 : vector<2x128xf32>
    %325 = vector.extract_strided_slice %324 {offsets = [0, 0], sizes = [2, 96], strides = [1, 1]} : vector<2x128xf32> to vector<2x96xf32>
    %cst_125 = arith.constant 1.000000e+00 : f32
    %326 = vector.broadcast %cst_125 : f32 to vector<2x96xf32>
    %327 = arith.addf %325, %326 : vector<2x96xf32>
    %cst_126 = arith.constant 5.000000e-01 : f32
    %328 = vector.broadcast %cst_126 : f32 to vector<2x96xf32>
    %329 = arith.mulf %328, %327 : vector<2x96xf32>
    %330 = vector.extract_strided_slice %329 {offsets = [0, 0], sizes = [2, 32], strides = [1, 1]} : vector<2x96xf32> to vector<2x32xf32>
    %331 = vector.extract_strided_slice %329 {offsets = [0, 32], sizes = [2, 32], strides = [1, 1]} : vector<2x96xf32> to vector<2x32xf32>
    %332 = vector.extract_strided_slice %329 {offsets = [0, 64], sizes = [2, 32], strides = [1, 1]} : vector<2x96xf32> to vector<2x32xf32>
    %333 = vector.extract_strided_slice %324 {offsets = [0, 96], sizes = [2, 32], strides = [1, 1]} : vector<2x128xf32> to vector<2x32xf32>
    %334 = arith.mulf %331, %316 : vector<2x32xf32>
    %335 = arith.mulf %330, %333 : vector<2x32xf32>
    %336 = arith.addf %334, %335 : vector<2x32xf32>
    %337 = math.tanh %336 : vector<2x32xf32>
    %338 = arith.mulf %332, %337 : vector<2x32xf32>
    %339 = arith.truncf %338 : vector<2x32xf32> to vector<2x32xbf16>
    %c14_127 = arith.constant 14 : index
    %c0_128 = arith.constant 0 : index
    %340 = vector.load %arg11[%c14_127, %c0_128] : memref<16x32xbf16, #tpu.memory_space<vmem>>, vector<2x32xbf16>
    tpu.vector_store %arg11[%c14_127, %c0_128], %339 {strides = array<i32>} : memref<16x32xbf16, #tpu.memory_space<vmem>>, vector<2x32xbf16>,
    %c0_129 = arith.constant 0 : index
    %c0_130 = arith.constant 0 : index
    %341 = vector.load %arg11[%c0_129, %c0_130] : memref<16x32xbf16, #tpu.memory_space<vmem>>, vector<16x32xbf16>
    %c0_131 = arith.constant 0 : index
    %c0_132 = arith.constant 0 : index
    %342 = vector.load %arg8[%c0_131, %c0_132] : memref<32x8xbf16, #tpu.memory_space<vmem>>, vector<32x8xbf16>
    %cst_133 = arith.constant dense<0.000000e+00> : vector<16x8xf32>
    %343 = tpu.matmul %341, %342, %cst_133 {dimension_numbers = #tpu.dot_dimension_numbers<[1], [0], [0], [1], [0, 0, 1, 1], [], []>} : vector<16x32xbf16>, vector<32x8xbf16>, vector<16x8xf32> -> vector<16x8xf32>
    %c0_134 = arith.constant 0 : index
    %c0_135 = arith.constant 0 : index
    %344 = vector.load %arg9[%c0_134, %c0_135] : memref<1x8xf32, #tpu.memory_space<vmem>>, vector<1x8xf32>
    %345 = vector.broadcast %344 : vector<1x8xf32> to vector<16x8xf32>
    %346 = arith.addf %343, %345 : vector<16x8xf32>
    %cst_136 = arith.constant dense<0xFF800000> : vector<8xf32>
    %347 = vector.multi_reduction <maximumf>, %346, %cst_136 [0] : vector<16x8xf32> to vector<8xf32>
    %348 = vector.shape_cast %347 : vector<8xf32> to vector<1x8xf32>
    %349 = vector.broadcast %348 : vector<1x8xf32> to vector<16x8xf32>
    %350 = arith.subf %346, %349 : vector<16x8xf32>
    %351 = math.exp %350 : vector<16x8xf32>
    %352 = tpu.iota {dimensions = array<i32: 1>} : vector<8x16xi32>
    %353 = tpu.iota {dimensions = array<i32: 0>} : vector<8x16xi32>
    %c2_i32 = arith.constant 2 : i32
    %354 = vector.broadcast %c2_i32 : i32 to vector<8x16xi32>
    %355 = arith.muli %353, %354 : vector<8x16xi32>
    %356 = arith.cmpi sge, %352, %355 : vector<8x16xi32>
    %c1_i32 = arith.constant 1 : i32
    %357 = vector.broadcast %c1_i32 : i32 to vector<8x16xi32>
    %358 = arith.addi %353, %357 : vector<8x16xi32>
    %c2_i32_137 = arith.constant 2 : i32
    %359 = vector.broadcast %c2_i32_137 : i32 to vector<8x16xi32>
    %360 = arith.muli %358, %359 : vector<8x16xi32>
    %361 = arith.cmpi slt, %352, %360 : vector<8x16xi32>
    %362 = arith.andi %356, %361 : vector<8x16xi1>
    %363 = arith.extui %362 : vector<8x16xi1> to vector<8x16xi32>
    %364 = arith.sitofp %363 : vector<8x16xi32> to vector<8x16xf32>
    %365 = tpu.iota {dimensions = array<i32: 0>} : vector<16x8xi32>
    %366 = tpu.iota {dimensions = array<i32: 1>} : vector<16x8xi32>
    %c2_i32_138 = arith.constant 2 : i32
    %367 = vector.broadcast %c2_i32_138 : i32 to vector<16x8xi32>
    %368 = arith.muli %366, %367 : vector<16x8xi32>
    %369 = arith.cmpi sge, %365, %368 : vector<16x8xi32>
    %c1_i32_139 = arith.constant 1 : i32
    %370 = vector.broadcast %c1_i32_139 : i32 to vector<16x8xi32>
    %371 = arith.addi %366, %370 : vector<16x8xi32>
    %c2_i32_140 = arith.constant 2 : i32
    %372 = vector.broadcast %c2_i32_140 : i32 to vector<16x8xi32>
    %373 = arith.muli %371, %372 : vector<16x8xi32>
    %374 = arith.cmpi slt, %365, %373 : vector<16x8xi32>
    %375 = arith.andi %369, %374 : vector<16x8xi1>
    %376 = arith.extui %375 : vector<16x8xi1> to vector<16x8xi32>
    %377 = arith.sitofp %376 : vector<16x8xi32> to vector<16x8xf32>
    %cst_141 = arith.constant dense<0.000000e+00> : vector<8x8xf32>
    %378 = tpu.matmul %364, %351, %cst_141 {dimension_numbers = #tpu.dot_dimension_numbers<[1], [0], [0], [1], [0, 0, 1, 1], [], []>} : vector<8x16xf32>, vector<16x8xf32>, vector<8x8xf32> -> vector<8x8xf32>
    %cst_142 = arith.constant dense<0.000000e+00> : vector<16x8xf32>
    %379 = tpu.matmul %377, %378, %cst_142 {dimension_numbers = #tpu.dot_dimension_numbers<[1], [0], [0], [1], [0, 0, 1, 1], [], []>} : vector<16x8xf32>, vector<8x8xf32>, vector<16x8xf32> -> vector<16x8xf32>
    %380 = tpu.reciprocal %379 {approx = true} : vector<16x8xf32> -> vector<16x8xf32>
    %381 = arith.mulf %351, %380 : vector<16x8xf32>
    %c0_143 = arith.constant 0 : index
    %c0_144 = arith.constant 0 : index
    %382 = vector.load %arg10[%c0_143, %c0_144] : memref<16x8xf32, #tpu.memory_space<vmem>>, vector<16x8xf32>
    tpu.vector_store %arg10[%c0_143, %c0_144], %381 {strides = array<i32>} : memref<16x8xf32, #tpu.memory_space<vmem>>, vector<16x8xf32>,
    return
  }
  func.func @transform_0(%arg0: i32) -> (i32, i32) {
    %c0_i32 = arith.constant 0 : i32
    %c0_i32_0 = arith.constant 0 : i32
    %c0_i32_1 = arith.constant 0 : i32
    return %c0_i32, %c0_i32_0 : i32, i32
  }
  func.func @transform_1(%arg0: i32) -> (i32, i32) {
    %c0_i32 = arith.constant 0 : i32
    %c0_i32_0 = arith.constant 0 : i32
    %c0_i32_1 = arith.constant 0 : i32
    return %c0_i32, %c0_i32_0 : i32, i32
  }
  func.func @transform_2(%arg0: i32) -> (i32, i32) {
    %c0_i32 = arith.constant 0 : i32
    %c0_i32_0 = arith.constant 0 : i32
    %c0_i32_1 = arith.constant 0 : i32
    return %c0_i32, %c0_i32_0 : i32, i32
  }
  func.func @transform_3(%arg0: i32) -> (i32, i32) {
    %c0_i32 = arith.constant 0 : i32
    %c0_i32_0 = arith.constant 0 : i32
    %c0_i32_1 = arith.constant 0 : i32
    return %c0_i32, %c0_i32_0 : i32, i32
  }
  func.func @transform_4(%arg0: i32) -> (i32, i32) {
    %c0_i32 = arith.constant 0 : i32
    %c0_i32_0 = arith.constant 0 : i32
    %c0_i32_1 = arith.constant 0 : i32
    return %c0_i32, %c0_i32_0 : i32, i32
  }
  func.func @transform_5(%arg0: i32) -> (i32, i32) {
    %c0_i32 = arith.constant 0 : i32
    %c0_i32_0 = arith.constant 0 : i32
    %c0_i32_1 = arith.constant 0 : i32
    return %c0_i32, %c0_i32_0 : i32, i32
  }
  func.func @transform_6(%arg0: i32) -> (i32, i32) {
    %c0_i32 = arith.constant 0 : i32
    %c0_i32_0 = arith.constant 0 : i32
    %c0_i32_1 = arith.constant 0 : i32
    return %c0_i32, %c0_i32_0 : i32, i32
  }
  func.func @transform_7(%arg0: i32) -> (i32, i32) {
    %c0_i32 = arith.constant 0 : i32
    %c0_i32_0 = arith.constant 0 : i32
    %c0_i32_1 = arith.constant 0 : i32
    return %c0_i32, %c0_i32_0 : i32, i32
  }
  func.func @transform_8(%arg0: i32) -> (i32, i32) {
    %c0_i32 = arith.constant 0 : i32
    %c0_i32_0 = arith.constant 0 : i32
    %c0_i32_1 = arith.constant 0 : i32
    return %c0_i32, %c0_i32_0 : i32, i32
  }
  func.func @transform_9(%arg0: i32) -> (i32, i32) {
    %c0_i32 = arith.constant 0 : i32
    %c0_i32_0 = arith.constant 0 : i32
    %c0_i32_1 = arith.constant 0 : i32
    return %c0_i32, %c0_i32_0 : i32, i32
  }
}

</mosaic_0001>

<bundles_post_ra>
// kernel: lstm_model_forward.1
= control target key start
LH: loop header
LB: loop body
LE: loop exit
PB: predicated region body
PF: predicated region fallthrough
CT: control target
= control target key end

     0   :  { %v2077_v0 = vmov 0.0   ;;  %vm2078_vm0 = vmmov 0   ;;  %vm51_vm1 = vcmask 130048   ;;  %v2079_v7 = vmov 0   ;;  %s2080_s18 = smov 32   ;;  %s2470_s1 = inlined_call_operand.vmem [shape: bf16[16,128], index: 1, kind: input, shape index: {}]   ;;  %s2471_s2 = inlined_call_operand.vmem [shape: bf16[32,128], index: 2, kind: input, shape index: {}]   ;;  %s2472_s0 = inlined_call_operand.vmem [shape: f32[16,16], index: 0, kind: input, shape index: {}]   ;;  %s2473_s3 = inlined_call_operand.vmem [shape: f32[1,128], index: 3, kind: input, shape index: {}]   ;;  %s2474_s4 = inlined_call_operand.vmem [shape: bf16[32,128], index: 4, kind: input, shape index: {}]   ;;  %s2475_s5 = inlined_call_operand.vmem [shape: bf16[32,128], index: 5, kind: input, shape index: {}]   ;;  %s2476_s6 = inlined_call_operand.vmem [shape: f32[1,128], index: 6, kind: input, shape index: {}]   ;;  %s2477_s7 = inlined_call_operand.vmem [shape: bf16[32,8], index: 7, kind: input, shape index: {}]   ;;  %s2478_s8 = inlined_call_operand.vmem [shape: f32[1,8], index: 8, kind: input, shape index: {}]   ;;  %s2479_s9 = inlined_call_operand.vmem [shape: f32[16,8], index: 9, kind: output, shape index: {}]  }
   0x1   :  { %1827 = vmatprep.subr.bf16.mxu0 %v2077_v0  ;;  %1833 = vmatprep.subr.bf16.mxu1 %v2077_v0  ;;  %v1994_v1 = vld [vmem:[%s2470_s1] sm:$0xff]   ;;  %v2140_v2 = vld [vmem:[%s2471_s2 + $0x8] sm:$0xff]   ;;  %vm115_vm2 = vcmask 261120   ;;  %vm187_vm3 = vcmask 253952   ;;  %vm341_vm4 = vcmask 256002   ;;  %vm264_vm5 = vcmask 254977  }
   0x2   :  { %1829 = vmatprep.mubr.msk.bf16.mxu0 %vm2078_vm0, %v2077_v0  ;;  %1837 = vmatprep.mubr.msk.bf16.mxu1 %vm2078_vm0, %v2077_v0  ;;  %v33_v3 = vld [vmem:[%s2472_s0] sm:$0xff]  ;;  %v34_v4 = vld [vmem:[%s2472_s0 + $0x8] sm:$0xff]  ;;  %vm418_vm6 = vcmask 257027   ;;  %vm1490_vm7 = vcmask 64512  }
   0x3   :  { %1828 = vmatpush3.bf16.msra.mxu0 %v1994_v1  ;;  %1834 = vmatpush3.bf16.msra.mxu1 %v2140_v2  ;;  %v35_v5 = vpack.c.bf16 %v34_v4, %v33_v3  ;;  %v2156_v6 = vld [vmem:[%s2471_s2] sm:$0xff]  }
   0x4   :  { %1841 = vmatprep.subr.bf16.mxu0 %v2077_v0  ;;  %1835 = vmatprep.subr.bf16.mxu1 %v2077_v0  ;;  %v1696_v8 = vld [vmem:[%s2473_s3] ss:$0 sm:$0xff]  ;;  %s2081_s3 = smov 64  }
   0x6   :  { %1830 = vmatmul.mubr.msk.bf16.vlgmr.msra.gmra.mxu0 %vm51_vm1, %v35_v5 }
   0x7   :  { %1842 = vmatpush3.bf16.msra.mxu0 %v2140_v2  ;;  %1845 = vmatprep.mubr.msk.bf16.mxu0 %vm2078_vm0, %v2077_v0 }
   0x8   :  { %1836 = vmatpush3.bf16.msra.mxu1 %v2156_v6  ;;  %1843 = vmatprep.subr.bf16.mxu0 %v2077_v0 }
   0x9   :  { %1849 = vmatprep.subr.bf16.mxu1 %v2077_v0 }
   0xb   :  { %1838 = vmatmul.mubr.bf16.vlgmr.msra.gmra.mxu1 %v2079_v7  ;;  %1844 = vmatpush3.bf16.msra.mxu0 %v2156_v6 }
   0xc   :  { %1850 = vmatpush3.bf16.msra.mxu1 %v2140_v2  ;;  %1853 = vmatprep.mubr.msk.bf16.mxu1 %vm2078_vm0, %v2077_v0 }
   0xd   :  { %1851 = vmatprep.subr.bf16.mxu1 %v2077_v0  ;;  %1857 = vmatprep.subr.bf16.mxu0 %v2077_v0 }
  0x10   :  { %1852 = vmatpush3.bf16.msra.mxu1 %v2156_v6 }
  0x11   :  { %1865 = vmatprep.subr.bf16.mxu1 %v2077_v0 }
  0xc6   :  { %v89_v9 = vpop.f32.mrf.mxu0 }
  0xc7   :  { %v90_v10 = vadd.f32 %v1696_v8, %v89_v9 }
  0xc8   :  { %v1831_v11 = vpop.f32.mrf.mxu0 }
  0xc9   :  { %96 = vst [vmem:[#allocation3] sm:$0xff] %v90_v10 }
  0xca   :  { %v92_v12 = vpop.f32.mrf.mxu0 }
  0xcb   :  { %v93_v13 = vadd.f32 %v1696_v8, %v92_v12  ;;  %v153_v14 = vpop.f32.mrf.mxu1 }
  0xcc   :  { %v1832_v15 = vpop.f32.mrf.mxu0 }
  0xcd   :  { %97 = vst [vmem:[#allocation3 + $0x8] sm:$0xff] %v93_v13  ;;  %v1839_v16 = vpop.f32.mrf.mxu1 }
  0xcf   :  { %v156_v17 = vpop.f32.mrf.mxu1 }
  0xd0   :  { %v102_v18 = vld [vmem:[#allocation3] sm:$0x3]  ;;  %v189_v34 = vld [vmem:[#allocation3 + $0x2] sm:$0x3]  ;;  %v266_v53 = vld [vmem:[#allocation3 + $0x4] sm:$0x3] }
  0xd1   :  { %v159_v19 = vadd.f32 %v153_v14, %v102_v18  ;;  %v1840_v20 = vpop.f32.mrf.mxu1  ;;  %v343_v12 = vld [vmem:[#allocation3 + $0x6] sm:$0x3] }
  0xd3   :  { %2005 = vtanh.f32 %v159_v19 }
  0xe0   :  { %v2006_v21 = vpop.eup %2005 }
  0xe1   :  { %165 = vrot.lane.b32.xlu0 %v2006_v21, %s2080_s18  ;;  %v161_v22 = vadd.f32 1.0, %v2006_v21 }
  0xe3   :  { %v162_v23 = vmul.f32 0.5, %v161_v22 }
  0xe5   :  { %v163_v26 = vmul.f32 0.0, %v162_v23 }
 0x153   :  { %v166_v24 = vpop.permute.xlu0 %165 }
 0x154   :  { %v168_v25 = vmul.f32 %v166_v24, %v162_v23 }
 0x156   :  { %170 = vrot.lane.b32.xlu0 %v168_v25, %s2080_s18 }
 0x1c8   :  { %v171_v27 = vpop.permute.xlu0 %170 }
 0x1c9   :  { %v173_v28 = vadd.f32 %v171_v27, %v163_v26 }
 0x1cb   :  { %2007 = vtanh.f32 %v173_v28 }
 0x1d8   :  { %v2008_v29 = vpop.eup %2007 }
 0x1d9   :  { %176 = vrot.lane.b32.xlu1 %v2008_v29, %s2080_s18 }
 0x24b   :  { %v177_v30 = vpop.permute.xlu1 %176 }
 0x24c   :  { %v179_v31 = vmul.f32 %v177_v30, %v162_v23 }
 0x24e   :  { %v2182_v32 = vpack.c.bf16 %v179_v31, %v179_v31  ;;  %v420_v31 = vld [vmem:[#allocation3 + $0x8] sm:$0x3] }
 0x250   :  { %190 = vrot.lane.b32.xlu1 %v2182_v32, %s2081_s3 }
 0x2c2   :  { %v191_v33 = vpop.permute.xlu1 %190 }
 0x2c3   :  { %1846 = vmatmul.mubr.msk.bf16.vlgmr.msra.gmra.mxu0 %vm115_vm2, %v191_v33 }
 0x2c4   :  { %1858 = vmatpush3.bf16.msra.mxu0 %v2140_v2  ;;  %1861 = vmatprep.mubr.msk.bf16.mxu0 %vm2078_vm0, %v2077_v0 }
 0x2c5   :  { %1859 = vmatprep.subr.bf16.mxu0 %v2077_v0 }
 0x2c8   :  { %1860 = vmatpush3.bf16.msra.mxu0 %v2156_v6 }
 0x2c9   :  { %1873 = vmatprep.subr.bf16.mxu0 %v2077_v0 }
 0x383   :  { %v229_v35 = vpop.f32.mrf.mxu0 }
 0x384   :  { %v235_v36 = vadd.f32 %v229_v35, %v189_v34 }
 0x385   :  { %v1847_v37 = vpop.f32.mrf.mxu0 }
 0x386   :  { %2009 = vtanh.f32 %v235_v36 }
 0x387   :  { %v232_v38 = vpop.f32.mrf.mxu0 }
 0x389   :  { %v1848_v39 = vpop.f32.mrf.mxu0 }
 0x393   :  { %v2010_v40 = vpop.eup %2009 }
 0x394   :  { %241 = vrot.lane.b32.xlu0 %v2010_v40, %s2080_s18  ;;  %v237_v41 = vadd.f32 1.0, %v2010_v40 }
 0x396   :  { %v238_v42 = vmul.f32 0.5, %v237_v41 }
 0x398   :  { %v239_v45 = vmul.f32 %v238_v42, %v173_v28 }
 0x406   :  { %v242_v43 = vpop.permute.xlu0 %241 }
 0x407   :  { %v244_v44 = vmul.f32 %v242_v43, %v238_v42 }
 0x409   :  { %246 = vrot.lane.b32.xlu1 %v244_v44, %s2080_s18 }
 0x47b   :  { %v247_v46 = vpop.permute.xlu1 %246 }
 0x47c   :  { %v249_v47 = vadd.f32 %v247_v46, %v239_v45 }
 0x47e   :  { %2011 = vtanh.f32 %v249_v47 }
 0x48b   :  { %v2012_v48 = vpop.eup %2011 }
 0x48c   :  { %252 = vrot.lane.b32.xlu0 %v2012_v48, %s2080_s18 }
 0x4fe   :  { %v253_v49 = vpop.permute.xlu0 %252 }
 0x4ff   :  { %v255_v50 = vmul.f32 %v253_v49, %v238_v42 }
 0x501   :  { %v2196_v51 = vpack.c.bf16 %v255_v50, %v255_v50 }
 0x503   :  { %267 = vrot.lane.b32.xlu1 %v2196_v51, %s2081_s3 }
 0x575   :  { %v268_v52 = vpop.permute.xlu1 %267 }
 0x576   :  { %1854 = vmatmul.mubr.msk.bf16.vlgmr.msra.gmra.mxu1 %vm115_vm2, %v268_v52  ;;  %v495_v52 = vld [vmem:[#allocation3 + $0xa] sm:$0x3] }
 0x577   :  { %1866 = vmatpush3.bf16.msra.mxu1 %v2140_v2  ;;  %1869 = vmatprep.mubr.msk.bf16.mxu1 %vm2078_vm0, %v2077_v0 }
 0x578   :  { %1867 = vmatprep.subr.bf16.mxu1 %v2077_v0 }
 0x57b   :  { %1868 = vmatpush3.bf16.msra.mxu1 %v2156_v6 }
 0x57c   :  { %1881 = vmatprep.subr.bf16.mxu1 %v2077_v0 }
 0x636   :  { %v306_v54 = vpop.f32.mrf.mxu1 }
 0x637   :  { %v312_v55 = vadd.f32 %v306_v54, %v266_v53 }
 0x638   :  { %v1855_v56 = vpop.f32.mrf.mxu1 }
 0x639   :  { %2013 = vtanh.f32 %v312_v55 }
 0x63a   :  { %v309_v57 = vpop.f32.mrf.mxu1 }
 0x63c   :  { %v1856_v58 = vpop.f32.mrf.mxu1 }
 0x646   :  { %v2014_v59 = vpop.eup %2013 }
 0x647   :  { %318 = vrot.lane.b32.xlu0 %v2014_v59, %s2080_s18  ;;  %v314_v60 = vadd.f32 1.0, %v2014_v59 }
 0x649   :  { %v315_v61 = vmul.f32 0.5, %v314_v60 }
 0x64b   :  { %v316_v1 = vmul.f32 %v315_v61, %v249_v47 }
 0x6b9   :  { %v319_v62 = vpop.permute.xlu0 %318 }
 0x6ba   :  { %v321_v63 = vmul.f32 %v319_v62, %v315_v61 }
 0x6bc   :  { %323 = vrot.lane.b32.xlu1 %v321_v63, %s2080_s18 }
 0x72e   :  { %v324_v3 = vpop.permute.xlu1 %323 }
 0x72f   :  { %v326_v4 = vadd.f32 %v324_v3, %v316_v1 }
 0x731   :  { %2015 = vtanh.f32 %v326_v4 }
 0x73e   :  { %v2016_v5 = vpop.eup %2015 }
 0x73f   :  { %329 = vrot.lane.b32.xlu0 %v2016_v5, %s2080_s18 }
 0x7b1   :  { %v330_v8 = vpop.permute.xlu0 %329 }
 0x7b2   :  { %v332_v9 = vmul.f32 %v330_v8, %v315_v61 }
 0x7b4   :  { %v2210_v10 = vpack.c.bf16 %v332_v9, %v332_v9  ;;  %v571_v9 = vld [vmem:[#allocation3 + $0xc] sm:$0x3] }
 0x7b6   :  { %344 = vrot.lane.b32.xlu1 %v2210_v10, %s2081_s3 }
 0x828   :  { %v345_v11 = vpop.permute.xlu1 %344 }
 0x829   :  { %1862 = vmatmul.mubr.msk.bf16.vlgmr.msra.gmra.mxu0 %vm115_vm2, %v345_v11 }
 0x82a   :  { %1874 = vmatpush3.bf16.msra.mxu0 %v2140_v2  ;;  %1877 = vmatprep.mubr.msk.bf16.mxu0 %vm2078_vm0, %v2077_v0 }
 0x82b   :  { %1875 = vmatprep.subr.bf16.mxu0 %v2077_v0 }
 0x82e   :  { %1876 = vmatpush3.bf16.msra.mxu0 %v2156_v6 }
 0x82f   :  { %1889 = vmatprep.subr.bf16.mxu0 %v2077_v0 }
 0x8e9   :  { %v383_v13 = vpop.f32.mrf.mxu0 }
 0x8ea   :  { %v389_v14 = vadd.f32 %v383_v13, %v343_v12 }
 0x8eb   :  { %v1863_v15 = vpop.f32.mrf.mxu0 }
 0x8ec   :  { %2017 = vtanh.f32 %v389_v14 }
 0x8ed   :  { %v386_v16 = vpop.f32.mrf.mxu0 }
 0x8ef   :  { %v1864_v17 = vpop.f32.mrf.mxu0 }
 0x8f9   :  { %v2018_v18 = vpop.eup %2017 }
 0x8fa   :  { %395 = vrot.lane.b32.xlu0 %v2018_v18, %s2080_s18  ;;  %v391_v19 = vadd.f32 1.0, %v2018_v18 }
 0x8fc   :  { %v392_v20 = vmul.f32 0.5, %v391_v19 }
 0x8fe   :  { %v393_v23 = vmul.f32 %v392_v20, %v326_v4 }
 0x96c   :  { %v396_v21 = vpop.permute.xlu0 %395 }
 0x96d   :  { %v398_v22 = vmul.f32 %v396_v21, %v392_v20 }
 0x96f   :  { %400 = vrot.lane.b32.xlu1 %v398_v22, %s2080_s18 }
 0x9e1   :  { %v401_v24 = vpop.permute.xlu1 %400 }
 0x9e2   :  { %v403_v25 = vadd.f32 %v401_v24, %v393_v23 }
 0x9e4   :  { %2019 = vtanh.f32 %v403_v25 }
 0x9f1   :  { %v2020_v26 = vpop.eup %2019 }
 0x9f2   :  { %406 = vrot.lane.b32.xlu0 %v2020_v26, %s2080_s18 }
 0xa64   :  { %v407_v27 = vpop.permute.xlu0 %406 }
 0xa65   :  { %v409_v28 = vmul.f32 %v407_v27, %v392_v20 }
 0xa67   :  { %v2224_v29 = vpack.c.bf16 %v409_v28, %v409_v28 }
 0xa69   :  { %421 = vrot.lane.b32.xlu1 %v2224_v29, %s2081_s3 }
 0xadb   :  { %v422_v30 = vpop.permute.xlu1 %421 }
 0xadc   :  { %1870 = vmatmul.mubr.msk.bf16.vlgmr.msra.gmra.mxu1 %vm115_vm2, %v422_v30  ;;  %v647_v30 = vld [vmem:[#allocation3 + $0xe] sm:$0x3] }
 0xadd   :  { %1882 = vmatpush3.bf16.msra.mxu1 %v2140_v2  ;;  %1885 = vmatprep.mubr.msk.bf16.mxu1 %vm2078_vm0, %v2077_v0 }
 0xade   :  { %1883 = vmatprep.subr.bf16.mxu1 %v2077_v0 }
 0xae1   :  { %1884 = vmatpush3.bf16.msra.mxu1 %v2156_v6 }
 0xae2   :  { %1897 = vmatprep.subr.bf16.mxu1 %v2077_v0 }
 0xb9c   :  { %v460_v33 = vpop.f32.mrf.mxu1 }
 0xb9d   :  { %v466_v34 = vadd.f32 %v460_v33, %v420_v31 }
 0xb9e   :  { %v1871_v35 = vpop.f32.mrf.mxu1 }
 0xb9f   :  { %2021 = vtanh.f32 %v466_v34 }
 0xba0   :  { %v463_v36 = vpop.f32.mrf.mxu1 }
 0xba2   :  { %v1872_v37 = vpop.f32.mrf.mxu1 }
 0xbac   :  { %v2022_v38 = vpop.eup %2021 }
 0xbad   :  { %472 = vrot.lane.b32.xlu0 %v2022_v38, %s2080_s18  ;;  %v468_v39 = vadd.f32 1.0, %v2022_v38 }
 0xbaf   :  { %v469_v40 = vmul.f32 0.5, %v468_v39 }
 0xbb1   :  { %v470_v43 = vmul.f32 %v469_v40, %v403_v25 }
 0xc1f   :  { %v473_v41 = vpop.permute.xlu0 %472 }
 0xc20   :  { %v475_v42 = vmul.f32 %v473_v41, %v469_v40 }
 0xc22   :  { %477 = vrot.lane.b32.xlu1 %v475_v42, %s2080_s18  ;;  %v337_v42 = vrot.slane %v2210_v10, 6 }
 0xc94   :  { %v478_v44 = vpop.permute.xlu1 %477 }
 0xc95   :  { %v480_v45 = vadd.f32 %v478_v44, %v470_v43 }
 0xc97   :  { %2023 = vtanh.f32 %v480_v45 }
 0xca4   :  { %v2024_v46 = vpop.eup %2023 }
 0xca5   :  { %483 = vrot.lane.b32.xlu0 %v2024_v46, %s2080_s18 }
 0xd17   :  { %v484_v47 = vpop.permute.xlu0 %483 }
 0xd18   :  { %v486_v48 = vmul.f32 %v484_v47, %v469_v40 }
 0xd1a   :  { %v2238_v49 = vpack.c.bf16 %v486_v48, %v486_v48 }
 0xd1c   :  { %496 = vrot.lane.b32.xlu1 %v2238_v49, %s2081_s3 }
 0xd8e   :  { %v497_v50 = vpop.permute.xlu1 %496 }
 0xd8f   :  { %1878 = vmatmul.mubr.msk.bf16.vlgmr.msra.gmra.mxu0 %vm115_vm2, %v497_v50  ;;  %v260_v50 = vrot.slane %v2196_v51, 7  ;;  %v2295_v51 = vld [vmem:[%s2475_s5 + $0x8] sm:$0xff]  }
 0xd90   :  { %1890 = vmatpush3.bf16.msra.mxu0 %v2140_v2  ;;  %1893 = vmatprep.mubr.msk.bf16.mxu0 %vm2078_vm0, %v2077_v0 }
 0xd91   :  { %1891 = vmatprep.subr.bf16.mxu0 %v2077_v0 }
 0xd94   :  { %1892 = vmatpush3.bf16.msra.mxu0 %v2156_v6 }
 0xd95   :  { %1905 = vmatprep.subr.bf16.mxu0 %v2077_v0 }
 0xe4f   :  { %v535_v53 = vpop.f32.mrf.mxu0 }
 0xe50   :  { %v541_v54 = vadd.f32 %v535_v53, %v495_v52  ;;  %v414_v52 = vrot.slane %v2224_v29, 5 }
 0xe51   :  { %v1879_v55 = vpop.f32.mrf.mxu0 }
 0xe52   :  { %2025 = vtanh.f32 %v541_v54  ;;  %v1997_v54 = vld [vmem:[%s2474_s4 + $0x8] sm:$0xff]   ;;  %v1998_v55 = vld [vmem:[%s2474_s4] sm:$0xff]  }
 0xe53   :  { %v538_v56 = vpop.f32.mrf.mxu0 }
 0xe55   :  { %v1880_v57 = vpop.f32.mrf.mxu0 }
 0xe5f   :  { %v2026_v58 = vpop.eup %2025 }
 0xe60   :  { %547 = vrot.lane.b32.xlu0 %v2026_v58, %s2080_s18  ;;  %v543_v2 = vadd.f32 1.0, %v2026_v58  ;;  %v2304_v58 = vld [vmem:[%s2475_s5] sm:$0xff]  }
 0xe62   :  { %v544_v59 = vmul.f32 0.5, %v543_v2 }
 0xe64   :  { %v545_v62 = vmul.f32 %v544_v59, %v480_v45 }
 0xed2   :  { %v548_v60 = vpop.permute.xlu0 %547 }
 0xed3   :  { %v550_v61 = vmul.f32 %v548_v60, %v544_v59 }
 0xed5   :  { %552 = vrot.lane.b32.xlu1 %v550_v61, %s2080_s18 }
 0xf47   :  { %v553_v6 = vpop.permute.xlu1 %552 }
 0xf48   :  { %v555_v63 = vadd.f32 %v553_v6, %v545_v62 }
 0xf4a   :  { %2027 = vtanh.f32 %v555_v63 }
 0xf57   :  { %v2028_v1 = vpop.eup %2027 }
 0xf58   :  { %558 = vrot.lane.b32.xlu0 %v2028_v1, %s2080_s18 }
 0xfca   :  { %v559_v3 = vpop.permute.xlu0 %558 }
 0xfcb   :  { %v561_v4 = vmul.f32 %v559_v3, %v544_v59 }
 0xfcd   :  { %v2252_v5 = vpack.c.bf16 %v561_v4, %v561_v4  ;;  %v1716_v4 = vld [vmem:[%s2476_s6] ss:$0 sm:$0xff] }
 0xfcf   :  { %572 = vrot.lane.b32.xlu1 %v2252_v5, %s2081_s3  ;;  %v566_v53 = vrot.slane %v2252_v5, 7 }
0x1041   :  { %v573_v8 = vpop.permute.xlu1 %572 }
0x1042   :  { %1886 = vmatmul.mubr.msk.bf16.vlgmr.msra.gmra.mxu1 %vm115_vm2, %v573_v8 }
0x1043   :  { %1901 = vmatprep.mubr.msk.bf16.mxu1 %vm2078_vm0, %v2077_v0  ;;  %1898 = vmatpush3.bf16.msra.mxu1 %v1997_v54 }
0x1044   :  { %1899 = vmatprep.subr.bf16.mxu1 %v2077_v0 }
0x1047   :  { %1900 = vmatpush3.bf16.msra.mxu1 %v1998_v55 }
0x1048   :  { %1913 = vmatprep.subr.bf16.mxu1 %v2077_v0 }
0x1102   :  { %v611_v11 = vpop.f32.mrf.mxu1 }
0x1103   :  { %v617_v12 = vadd.f32 %v611_v11, %v571_v9 }
0x1104   :  { %v1887_v13 = vpop.f32.mrf.mxu1 }
0x1105   :  { %2029 = vtanh.f32 %v617_v12 }
0x1106   :  { %v614_v14 = vpop.f32.mrf.mxu1 }
0x1108   :  { %v1888_v15 = vpop.f32.mrf.mxu1 }
0x1112   :  { %v2030_v16 = vpop.eup %2029 }
0x1113   :  { %623 = vrot.lane.b32.xlu0 %v2030_v16, %s2080_s18  ;;  %v619_v17 = vadd.f32 1.0, %v2030_v16 }
0x1115   :  { %v620_v18 = vmul.f32 0.5, %v619_v17 }
0x1117   :  { %v621_v21 = vmul.f32 %v620_v18, %v555_v63 }
0x1185   :  { %v624_v19 = vpop.permute.xlu0 %623 }
0x1186   :  { %v626_v20 = vmul.f32 %v624_v19, %v620_v18 }
0x1188   :  { %628 = vrot.lane.b32.xlu1 %v626_v20, %s2080_s18 }
0x11fa   :  { %v629_v22 = vpop.permute.xlu1 %628 }
0x11fb   :  { %v631_v23 = vadd.f32 %v629_v22, %v621_v21 }
0x11fd   :  { %2031 = vtanh.f32 %v631_v23 }
0x120a   :  { %v2032_v24 = vpop.eup %2031 }
0x120b   :  { %634 = vrot.lane.b32.xlu0 %v2032_v24, %s2080_s18 }
0x127d   :  { %v635_v25 = vpop.permute.xlu0 %634 }
0x127e   :  { %v637_v26 = vmul.f32 %v635_v25, %v620_v18 }
0x1280   :  { %v638_v27 = vpack.c.bf16 %v637_v26, %v637_v26 }
0x1282   :  { %648 = vrot.lane.b32.xlu1 %v638_v27, %s2081_s3  ;;  %v642_v43 = vrot.slane %v638_v27, 6 }
0x12f4   :  { %v649_v28 = vpop.permute.xlu1 %648 }
0x12f5   :  { %1894 = vmatmul.mubr.msk.bf16.vlgmr.msra.gmra.mxu0 %vm115_vm2, %v649_v28 }
0x12f6   :  { %1909 = vmatprep.mubr.msk.bf16.mxu0 %vm2078_vm0, %v2077_v0  ;;  %1906 = vmatpush3.bf16.msra.mxu0 %v2295_v51 }
0x12f7   :  { %1907 = vmatprep.subr.bf16.mxu0 %v2077_v0 }
0x12fa   :  { %1908 = vmatpush3.bf16.msra.mxu0 %v2304_v58 }
0x12fb   :  { %1921 = vmatprep.subr.bf16.mxu0 %v2077_v0 }
0x12fd   :  { %1910 = vmatmul.mubr.bf16.vlgmr.msra.gmra.mxu0 %v2079_v7 }
0x12fe   :  { %1922 = vmatpush3.bf16.msra.mxu0 %v2295_v51  ;;  %1925 = vmatprep.mubr.msk.bf16.mxu0 %vm2078_vm0, %v2077_v0 }
0x12ff   :  { %1923 = vmatprep.subr.bf16.mxu0 %v2077_v0 }
0x1302   :  { %1924 = vmatpush3.bf16.msra.mxu0 %v2304_v58 }
0x1303   :  { %1937 = vmatprep.subr.bf16.mxu0 %v2077_v0 }
0x13b5   :  { %v687_v31 = vpop.f32.mrf.mxu0 }
0x13b6   :  { %v693_v33 = vadd.f32 %v687_v31, %v647_v30 }
0x13b7   :  { %v1895_v34 = vpop.f32.mrf.mxu0 }
0x13b8   :  { %2033 = vtanh.f32 %v693_v33 }
0x13b9   :  { %v690_v35 = vpop.f32.mrf.mxu0 }
0x13bb   :  { %v1896_v36 = vpop.f32.mrf.mxu0 }
0x13bd   :  { %v850_v6 = vpop.f32.mrf.mxu0 }
0x13bf   :  { %v1911_v63 = vpop.f32.mrf.mxu0 }
0x13c1   :  { %v853_v1 = vpop.f32.mrf.mxu0 }
0x13c3   :  { %v1912_v3 = vpop.f32.mrf.mxu0 }
0x13c5   :  { %v2034_v37 = vpop.eup %2033 }
0x13c6   :  { %699 = vrot.lane.b32.xlu0 %v2034_v37, %s2080_s18  ;;  %v695_v38 = vadd.f32 1.0, %v2034_v37 }
0x13c8   :  { %v696_v39 = vmul.f32 0.5, %v695_v38 }
0x13ca   :  { %v697_v44 = vmul.f32 %v696_v39, %v631_v23 }
0x1438   :  { %v700_v40 = vpop.permute.xlu0 %699 }
0x1439   :  { %v702_v41 = vmul.f32 %v700_v40, %v696_v39 }
0x143b   :  { %704 = vrot.lane.b32.xlu1 %v702_v41, %s2080_s18 }
0x143f   :  { %184 = vrot.lane.b32.xlu1 %v2182_v32, %s2081_s3 }
0x1443   :  { %338 = vrot.lane.b32.xlu1 %v337_v42, %s2081_s3 }
0x1447   :  { %491 = vrot.lane.b32.xlu1 %v2238_v49, %s2081_s3 }
0x144b   :  { %643 = vrot.lane.b32.xlu1 %v642_v43, %s2081_s3 }
0x14ad   :  { %v705_v45 = vpop.permute.xlu1 %704 }
0x14ae   :  { %v707_v46 = vadd.f32 %v705_v45, %v697_v44 }
0x14b0   :  { %2035 = vtanh.f32 %v707_v46 }
0x14b1   :  { %v185_v47 = vpop.permute.xlu1 %184 }
0x14b2   :  { %188 = vst.msk [vmem:[#allocation2] sm:$0x1] %vm187_vm3, %v185_v47 }
0x14b5   :  { %v339_v32 = vpop.permute.xlu1 %338 }
0x14b6   :  { %342 = vst.msk [vmem:[#allocation2] sm:$0x4] %vm341_vm4, %v339_v32 }
0x14b9   :  { %v492_v10 = vpop.permute.xlu1 %491 }
0x14ba   :  { %494 = vst.msk [vmem:[#allocation2 + $0x4] sm:$0x1] %vm187_vm3, %v492_v10 }
0x14bd   :  { %v2036_v48 = vpop.eup %2035  ;;  %v644_v49 = vpop.permute.xlu1 %643 }
0x14be   :  { %646 = vst.msk [vmem:[#allocation2 + $0x4] sm:$0x4] %vm341_vm4, %v644_v49  ;;  %710 = vrot.lane.b32.xlu0 %v2036_v48, %s2080_s18 }
0x14c2   :  { %261 = vrot.lane.b32.xlu0 %v260_v50, %s2081_s3 }
0x14c6   :  { %415 = vrot.lane.b32.xlu0 %v414_v52, %s2081_s3 }
0x14ca   :  { %567 = vrot.lane.b32.xlu0 %v566_v53, %s2081_s3 }
0x1530   :  { %v711_v29 = vpop.permute.xlu0 %710 }
0x1531   :  { %v713_v56 = vmul.f32 %v711_v29, %v696_v39 }
0x1533   :  { %v1756_v57 = vpack.c.bf16 %v713_v56, %v713_v56 }
0x1534   :  { %v262_v2 = vpop.permute.xlu0 %261 }
0x1535   :  { %v718_v59 = vrot.slane %v1756_v57, 5  ;;  %265 = vst.msk [vmem:[#allocation2] sm:$0x2] %vm264_vm5, %v262_v2 }
0x1537   :  { %719 = vrot.lane.b32.xlu0 %v718_v59, %s2081_s3 }
0x1538   :  { %v416_v60 = vpop.permute.xlu0 %415 }
0x1539   :  { %419 = vst.msk [vmem:[#allocation2] sm:$0x8] %vm418_vm6, %v416_v60 }
0x153c   :  { %v568_v61 = vpop.permute.xlu0 %567 }
0x153d   :  { %570 = vst.msk [vmem:[#allocation2 + $0x4] sm:$0x2] %vm264_vm5, %v568_v61 }
0x15a9   :  { %v720_v62 = vpop.permute.xlu0 %719 }
0x15aa   :  { %722 = vst.msk [vmem:[#allocation2 + $0x4] sm:$0x8] %vm418_vm6, %v720_v62 }
0x15b1   :  { %v2000_v7 = vld [vmem:[#allocation2] sm:$0xff]  }
0x15b2   :  { %1902 = vmatmul.mubr.msk.bf16.vlgmr.msra.gmra.mxu1 %vm115_vm2, %v2000_v7 }
0x15b3   :  { %1914 = vmatpush3.bf16.msra.mxu1 %v2295_v51  ;;  %1917 = vmatprep.mubr.msk.bf16.mxu1 %vm2078_vm0, %v2077_v0 }
0x15b4   :  { %1915 = vmatprep.subr.bf16.mxu1 %v2077_v0 }
0x15b7   :  { %1916 = vmatpush3.bf16.msra.mxu1 %v2304_v58 }
0x15b8   :  { %1929 = vmatprep.subr.bf16.mxu1 %v2077_v0 }
0x1672   :  { %v790_v5 = vpop.f32.mrf.mxu1 }
0x1673   :  { %v791_v8 = vadd.f32 %v1716_v4, %v790_v5 }
0x1674   :  { %v1903_v9 = vpop.f32.mrf.mxu1 }
0x1675   :  { %797 = vst [vmem:[#allocation3] sm:$0xff] %v791_v8 }
0x1676   :  { %v793_v11 = vpop.f32.mrf.mxu1 }
0x1677   :  { %v794_v12 = vadd.f32 %v1716_v4, %v793_v11 }
0x1678   :  { %v1904_v13 = vpop.f32.mrf.mxu1 }
0x1679   :  { %798 = vst [vmem:[#allocation3 + $0x8] sm:$0xff] %v794_v12 }
0x167c   :  { %v803_v14 = vld [vmem:[#allocation3] sm:$0x3]  ;;  %v885_v30 = vld [vmem:[#allocation3 + $0x2] sm:$0x3]  ;;  %v961_v48 = vld [vmem:[#allocation3 + $0x4] sm:$0x3] }
0x167d   :  { %v856_v15 = vadd.f32 %v850_v6, %v803_v14  ;;  %v1037_v3 = vld [vmem:[#allocation3 + $0x6] sm:$0x3] }
0x167f   :  { %2037 = vtanh.f32 %v856_v15 }
0x168c   :  { %v2038_v16 = vpop.eup %2037 }
0x168d   :  { %862 = vrot.lane.b32.xlu1 %v2038_v16, %s2080_s18  ;;  %v858_v17 = vadd.f32 1.0, %v2038_v16 }
0x168f   :  { %v859_v18 = vmul.f32 0.5, %v858_v17 }
0x1691   :  { %v860_v21 = vmul.f32 0.0, %v859_v18 }
0x16ff   :  { %v863_v19 = vpop.permute.xlu1 %862 }
0x1700   :  { %v865_v20 = vmul.f32 %v863_v19, %v859_v18 }
0x1702   :  { %867 = vrot.lane.b32.xlu0 %v865_v20, %s2080_s18 }
0x1774   :  { %v868_v22 = vpop.permute.xlu0 %867 }
0x1775   :  { %v870_v23 = vadd.f32 %v868_v22, %v860_v21 }
0x1777   :  { %2039 = vtanh.f32 %v870_v23 }
0x1784   :  { %v2040_v24 = vpop.eup %2039 }
0x1785   :  { %873 = vrot.lane.b32.xlu1 %v2040_v24, %s2080_s18 }
0x17f7   :  { %v874_v25 = vpop.permute.xlu1 %873 }
0x17f8   :  { %v876_v26 = vmul.f32 %v874_v25, %v859_v18  ;;  %v1113_v25 = vld [vmem:[#allocation3 + $0x8] sm:$0x3] }
0x17fa   :  { %v2333_v27 = vpack.c.bf16 %v876_v26, %v876_v26 }
0x17fc   :  { %886 = vrot.lane.b32.xlu0 %v2333_v27, %s2081_s3 }
0x186e   :  { %v887_v28 = vpop.permute.xlu0 %886 }
0x186f   :  { %1918 = vmatmul.mubr.msk.bf16.vlgmr.msra.gmra.mxu1 %vm115_vm2, %v887_v28 }
0x1870   :  { %1930 = vmatpush3.bf16.msra.mxu1 %v2295_v51  ;;  %1933 = vmatprep.mubr.msk.bf16.mxu1 %vm2078_vm0, %v2077_v0 }
0x1871   :  { %1931 = vmatprep.subr.bf16.mxu1 %v2077_v0 }
0x1874   :  { %1932 = vmatpush3.bf16.msra.mxu1 %v2304_v58 }
0x1875   :  { %1945 = vmatprep.subr.bf16.mxu1 %v2077_v0 }
0x192f   :  { %v925_v31 = vpop.f32.mrf.mxu1 }
0x1930   :  { %v931_v33 = vadd.f32 %v925_v31, %v885_v30 }
0x1931   :  { %v1919_v34 = vpop.f32.mrf.mxu1 }
0x1932   :  { %2041 = vtanh.f32 %v931_v33 }
0x1933   :  { %v928_v35 = vpop.f32.mrf.mxu1 }
0x1935   :  { %v1920_v36 = vpop.f32.mrf.mxu1 }
0x193f   :  { %v2042_v37 = vpop.eup %2041 }
0x1940   :  { %937 = vrot.lane.b32.xlu1 %v2042_v37, %s2080_s18  ;;  %v933_v38 = vadd.f32 1.0, %v2042_v37 }
0x1942   :  { %v934_v39 = vmul.f32 0.5, %v933_v38 }
0x1944   :  { %v935_v42 = vmul.f32 %v934_v39, %v870_v23 }
0x19b2   :  { %v938_v40 = vpop.permute.xlu1 %937 }
0x19b3   :  { %v940_v41 = vmul.f32 %v938_v40, %v934_v39 }
0x19b5   :  { %942 = vrot.lane.b32.xlu0 %v940_v41, %s2080_s18 }
0x1a27   :  { %v943_v43 = vpop.permute.xlu0 %942 }
0x1a28   :  { %v945_v44 = vadd.f32 %v943_v43, %v935_v42 }
0x1a2a   :  { %2043 = vtanh.f32 %v945_v44 }
0x1a37   :  { %v2044_v45 = vpop.eup %2043 }
0x1a38   :  { %948 = vrot.lane.b32.xlu1 %v2044_v45, %s2080_s18 }
0x1aaa   :  { %v949_v46 = vpop.permute.xlu1 %948 }
0x1aab   :  { %v951_v47 = vmul.f32 %v949_v46, %v934_v39 }
0x1aad   :  { %v2347_v32 = vpack.c.bf16 %v951_v47, %v951_v47  ;;  %v1188_v47 = vld [vmem:[#allocation3 + $0xa] sm:$0x3] }
0x1aaf   :  { %962 = vrot.lane.b32.xlu0 %v2347_v32, %s2081_s3 }
0x1b21   :  { %v963_v10 = vpop.permute.xlu0 %962 }
0x1b22   :  { %1926 = vmatmul.mubr.msk.bf16.vlgmr.msra.gmra.mxu0 %vm115_vm2, %v963_v10 }
0x1b23   :  { %1938 = vmatpush3.bf16.msra.mxu0 %v2295_v51  ;;  %1941 = vmatprep.mubr.msk.bf16.mxu0 %vm2078_vm0, %v2077_v0 }
0x1b24   :  { %1939 = vmatprep.subr.bf16.mxu0 %v2077_v0 }
0x1b27   :  { %1940 = vmatpush3.bf16.msra.mxu0 %v2304_v58 }
0x1b28   :  { %1953 = vmatprep.subr.bf16.mxu0 %v2077_v0 }
0x1be2   :  { %v1001_v49 = vpop.f32.mrf.mxu0 }
0x1be3   :  { %v1007_v50 = vadd.f32 %v1001_v49, %v961_v48 }
0x1be4   :  { %v1927_v52 = vpop.f32.mrf.mxu0 }
0x1be5   :  { %2045 = vtanh.f32 %v1007_v50 }
0x1be6   :  { %v1004_v53 = vpop.f32.mrf.mxu0 }
0x1be8   :  { %v1928_v54 = vpop.f32.mrf.mxu0 }
0x1bf2   :  { %v2046_v55 = vpop.eup %2045 }
0x1bf3   :  { %1013 = vrot.lane.b32.xlu1 %v2046_v55, %s2080_s18  ;;  %v1009_v29 = vadd.f32 1.0, %v2046_v55 }
0x1bf5   :  { %v1010_v56 = vmul.f32 0.5, %v1009_v29 }
0x1bf7   :  { %v1011_v59 = vmul.f32 %v1010_v56, %v945_v44 }
0x1c65   :  { %v1014_v57 = vpop.permute.xlu1 %1013 }
0x1c66   :  { %v1016_v2 = vmul.f32 %v1014_v57, %v1010_v56 }
0x1c68   :  { %1018 = vrot.lane.b32.xlu0 %v1016_v2, %s2080_s18 }
0x1cda   :  { %v1019_v60 = vpop.permute.xlu0 %1018 }
0x1cdb   :  { %v1021_v61 = vadd.f32 %v1019_v60, %v1011_v59 }
0x1cdd   :  { %2047 = vtanh.f32 %v1021_v61 }
0x1cea   :  { %v2048_v62 = vpop.eup %2047 }
0x1ceb   :  { %1024 = vrot.lane.b32.xlu1 %v2048_v62, %s2080_s18 }
0x1d5d   :  { %v1025_v7 = vpop.permute.xlu1 %1024 }
0x1d5e   :  { %v1027_v6 = vmul.f32 %v1025_v7, %v1010_v56  ;;  %v1264_v7 = vld [vmem:[#allocation3 + $0xc] sm:$0x3] }
0x1d60   :  { %v2361_v63 = vpack.c.bf16 %v1027_v6, %v1027_v6 }
0x1d62   :  { %1038 = vrot.lane.b32.xlu0 %v2361_v63, %s2081_s3 }
0x1dd4   :  { %v1039_v1 = vpop.permute.xlu0 %1038 }
0x1dd5   :  { %1934 = vmatmul.mubr.msk.bf16.vlgmr.msra.gmra.mxu1 %vm115_vm2, %v1039_v1 }
0x1dd6   :  { %1946 = vmatpush3.bf16.msra.mxu1 %v2295_v51  ;;  %1949 = vmatprep.mubr.msk.bf16.mxu1 %vm2078_vm0, %v2077_v0 }
0x1dd7   :  { %1947 = vmatprep.subr.bf16.mxu1 %v2077_v0 }
0x1dda   :  { %1948 = vmatpush3.bf16.msra.mxu1 %v2304_v58 }
0x1ddb   :  { %1961 = vmatprep.subr.bf16.mxu1 %v2077_v0 }
0x1e95   :  { %v1077_v4 = vpop.f32.mrf.mxu1 }
0x1e96   :  { %v1083_v5 = vadd.f32 %v1077_v4, %v1037_v3 }
0x1e97   :  { %v1935_v8 = vpop.f32.mrf.mxu1 }
0x1e98   :  { %2049 = vtanh.f32 %v1083_v5 }
0x1e99   :  { %v1080_v9 = vpop.f32.mrf.mxu1 }
0x1e9b   :  { %v1936_v11 = vpop.f32.mrf.mxu1 }
0x1ea5   :  { %v2050_v12 = vpop.eup %2049 }
0x1ea6   :  { %1089 = vrot.lane.b32.xlu1 %v2050_v12, %s2080_s18  ;;  %v1085_v13 = vadd.f32 1.0, %v2050_v12 }
0x1ea8   :  { %v1086_v14 = vmul.f32 0.5, %v1085_v13 }
0x1eaa   :  { %v1087_v17 = vmul.f32 %v1086_v14, %v1021_v61 }
0x1f18   :  { %v1090_v15 = vpop.permute.xlu1 %1089 }
0x1f19   :  { %v1092_v16 = vmul.f32 %v1090_v15, %v1086_v14 }
0x1f1b   :  { %1094 = vrot.lane.b32.xlu0 %v1092_v16, %s2080_s18 }
0x1f8d   :  { %v1095_v18 = vpop.permute.xlu0 %1094 }
0x1f8e   :  { %v1097_v19 = vadd.f32 %v1095_v18, %v1087_v17 }
0x1f90   :  { %2051 = vtanh.f32 %v1097_v19 }
0x1f9d   :  { %v2052_v20 = vpop.eup %2051 }
0x1f9e   :  { %1100 = vrot.lane.b32.xlu1 %v2052_v20, %s2080_s18 }
0x2010   :  { %v1101_v21 = vpop.permute.xlu1 %1100 }
0x2011   :  { %v1103_v22 = vmul.f32 %v1101_v21, %v1086_v14 }
0x2013   :  { %v2375_v23 = vpack.c.bf16 %v1103_v22, %v1103_v22  ;;  %v1340_v22 = vld [vmem:[#allocation3 + $0xe] sm:$0x3] }
0x2015   :  { %1114 = vrot.lane.b32.xlu0 %v2375_v23, %s2081_s3 }
0x2087   :  { %v1115_v24 = vpop.permute.xlu0 %1114 }
0x2088   :  { %1942 = vmatmul.mubr.msk.bf16.vlgmr.msra.gmra.mxu0 %vm115_vm2, %v1115_v24 }
0x2089   :  { %1954 = vmatpush3.bf16.msra.mxu0 %v2295_v51  ;;  %1957 = vmatprep.mubr.msk.bf16.mxu0 %vm2078_vm0, %v2077_v0 }
0x208a   :  { %1955 = vmatprep.subr.bf16.mxu0 %v2077_v0 }
0x208d   :  { %1956 = vmatpush3.bf16.msra.mxu0 %v2304_v58 }
0x208e   :  { %1969 = vmatprep.subr.bf16.mxu0 %v2077_v0 }
0x2148   :  { %v1153_v26 = vpop.f32.mrf.mxu0 }
0x2149   :  { %v1159_v28 = vadd.f32 %v1153_v26, %v1113_v25 }
0x214a   :  { %v1943_v30 = vpop.f32.mrf.mxu0 }
0x214b   :  { %2053 = vtanh.f32 %v1159_v28 }
0x214c   :  { %v1156_v31 = vpop.f32.mrf.mxu0 }
0x214e   :  { %v1944_v33 = vpop.f32.mrf.mxu0 }
0x2158   :  { %v2054_v34 = vpop.eup %2053 }
0x2159   :  { %1165 = vrot.lane.b32.xlu1 %v2054_v34, %s2080_s18  ;;  %v1161_v35 = vadd.f32 1.0, %v2054_v34 }
0x215b   :  { %v1162_v36 = vmul.f32 0.5, %v1161_v35 }
0x215d   :  { %v1163_v39 = vmul.f32 %v1162_v36, %v1097_v19 }
0x21cb   :  { %v1166_v37 = vpop.permute.xlu1 %1165 }
0x21cc   :  { %v1168_v38 = vmul.f32 %v1166_v37, %v1162_v36  ;;  %v1032_v37 = vrot.slane %v2361_v63, 6 }
0x21ce   :  { %1170 = vrot.lane.b32.xlu0 %v1168_v38, %s2080_s18 }
0x2240   :  { %v1171_v40 = vpop.permute.xlu0 %1170 }
0x2241   :  { %v1173_v41 = vadd.f32 %v1171_v40, %v1163_v39 }
0x2243   :  { %2055 = vtanh.f32 %v1173_v41 }
0x2250   :  { %v2056_v42 = vpop.eup %2055 }
0x2251   :  { %1176 = vrot.lane.b32.xlu1 %v2056_v42, %s2080_s18 }
0x22c3   :  { %v1177_v43 = vpop.permute.xlu1 %1176 }
0x22c4   :  { %v1179_v44 = vmul.f32 %v1177_v43, %v1162_v36 }
0x22c6   :  { %v2389_v45 = vpack.c.bf16 %v1179_v44, %v1179_v44 }
0x22c8   :  { %1189 = vrot.lane.b32.xlu0 %v2389_v45, %s2081_s3 }
0x233a   :  { %v1190_v46 = vpop.permute.xlu0 %1189 }
0x233b   :  { %1950 = vmatmul.mubr.msk.bf16.vlgmr.msra.gmra.mxu1 %vm115_vm2, %v1190_v46  ;;  %v1108_v46 = vrot.slane %v2375_v23, 5 }
0x233c   :  { %1962 = vmatpush3.bf16.msra.mxu1 %v2295_v51  ;;  %1965 = vmatprep.mubr.msk.bf16.mxu1 %vm2078_vm0, %v2077_v0 }
0x233d   :  { %1963 = vmatprep.subr.bf16.mxu1 %v2077_v0 }
0x2340   :  { %1964 = vmatpush3.bf16.msra.mxu1 %v2304_v58 }
0x2341   :  { %1977 = vmatprep.subr.mxu1 %v2077_v0 }
0x23fb   :  { %v1228_v10 = vpop.f32.mrf.mxu1 }
0x23fc   :  { %v1234_v48 = vadd.f32 %v1228_v10, %v1188_v47  ;;  %v2002_v10 = vld [vmem:[%s2477_s7 + $0x8] sm:$0xff]  }
0x23fd   :  { %v1951_v49 = vpop.f32.mrf.mxu1 }
0x23fe   :  { %2057 = vtanh.f32 %v1234_v48  ;;  %v2003_v48 = vld [vmem:[%s2477_s7] sm:$0xff]  }
0x23ff   :  { %v1231_v50 = vpop.f32.mrf.mxu1 }
0x2401   :  { %v1952_v52 = vpop.f32.mrf.mxu1 }
0x240b   :  { %v2058_v53 = vpop.eup %2057 }
0x240c   :  { %1240 = vrot.lane.b32.xlu1 %v2058_v53, %s2080_s18  ;;  %v1236_v51 = vadd.f32 1.0, %v2058_v53 }
0x240e   :  { %v1237_v54 = vmul.f32 0.5, %v1236_v51 }
0x2410   :  { %v1238_v56 = vmul.f32 %v1237_v54, %v1173_v41 }
0x247e   :  { %v1241_v55 = vpop.permute.xlu1 %1240 }
0x247f   :  { %v1243_v29 = vmul.f32 %v1241_v55, %v1237_v54 }
0x2481   :  { %1245 = vrot.lane.b32.xlu0 %v1243_v29, %s2080_s18  ;;  %v1738_v29 = vld [vmem:[%s2478_s8] ss:$0 sm:$0xff] }
0x24f3   :  { %v1246_v58 = vpop.permute.xlu0 %1245 }
0x24f4   :  { %v1248_v57 = vadd.f32 %v1246_v58, %v1238_v56 }
0x24f6   :  { %2059 = vtanh.f32 %v1248_v57 }
0x2503   :  { %v2060_v2 = vpop.eup %2059 }
0x2504   :  { %1251 = vrot.lane.b32.xlu1 %v2060_v2, %s2080_s18 }
0x2576   :  { %v1252_v59 = vpop.permute.xlu1 %1251 }
0x2577   :  { %v1254_v60 = vmul.f32 %v1252_v59, %v1237_v54 }
0x2579   :  { %v2403_v61 = vpack.c.bf16 %v1254_v60, %v1254_v60 }
0x257b   :  { %1265 = vrot.lane.b32.xlu0 %v2403_v61, %s2081_s3  ;;  %v1259_v47 = vrot.slane %v2403_v61, 7 }
0x25ed   :  { %v1266_v62 = vpop.permute.xlu0 %1265 }
0x25ee   :  { %1958 = vmatmul.mubr.msk.bf16.vlgmr.msra.gmra.mxu0 %vm115_vm2, %v1266_v62 }
0x25ef   :  { %1973 = vmatprep.mubr.msk.bf16.mxu0 %vm2078_vm0, %v2077_v0  ;;  %1970 = vmatpush3.bf16.msra.mxu0 %v2002_v10 }
0x25f0   :  { %1971 = vmatprep.subr.bf16.mxu0 %v2077_v0 }
0x25f3   :  { %1972 = vmatpush3.bf16.msra.mxu0 %v2003_v48 }
0x26ae   :  { %v1304_v6 = vpop.f32.mrf.mxu0 }
0x26af   :  { %v1310_v1 = vadd.f32 %v1304_v6, %v1264_v7 }
0x26b0   :  { %v1959_v3 = vpop.f32.mrf.mxu0 }
0x26b1   :  { %2061 = vtanh.f32 %v1310_v1 }
0x26b2   :  { %v1307_v4 = vpop.f32.mrf.mxu0 }
0x26b4   :  { %v1960_v5 = vpop.f32.mrf.mxu0 }
0x26be   :  { %v2062_v8 = vpop.eup %2061 }
0x26bf   :  { %1316 = vrot.lane.b32.xlu1 %v2062_v8, %s2080_s18  ;;  %v1312_v9 = vadd.f32 1.0, %v2062_v8  ;;  %v1506_v8 = vlaneseq }
0x26c1   :  { %v1313_v11 = vmul.f32 0.5, %v1312_v9 }
0x26c3   :  { %v1314_v14 = vmul.f32 %v1313_v11, %v1248_v57 }
0x2731   :  { %v1317_v12 = vpop.permute.xlu1 %1316 }
0x2732   :  { %v1319_v13 = vmul.f32 %v1317_v12, %v1313_v11 }
0x2734   :  { %1321 = vrot.lane.b32.xlu0 %v1319_v13, %s2080_s18  ;;  %v1509_v13 = vshrl.u32 %v1506_v8, 7 }
0x27a6   :  { %v1322_v15 = vpop.permute.xlu0 %1321 }
0x27a7   :  { %v1324_v16 = vadd.f32 %v1322_v15, %v1314_v14 }
0x27a9   :  { %2063 = vtanh.f32 %v1324_v16 }
0x27b6   :  { %v2064_v17 = vpop.eup %2063 }
0x27b7   :  { %1327 = vrot.lane.b32.xlu1 %v2064_v17, %s2080_s18  ;;  %v1507_v17 = vand.u32 127, %v1506_v8 }
0x2829   :  { %v1328_v18 = vpop.permute.xlu1 %1327 }
0x282a   :  { %v1330_v19 = vmul.f32 %v1328_v18, %v1313_v11  ;;  %v1510_v18 = vmul.u32 2, %v1509_v13 }
0x282c   :  { %v1331_v20 = vpack.c.bf16 %v1330_v19, %v1330_v19  ;;  %vm1511_vm8 = vcmp.ge.s32.totalorder %v1507_v17, %v1510_v18 }
0x282e   :  { %1341 = vrot.lane.b32.xlu0 %v1331_v20, %s2081_s3  ;;  %v1335_v38 = vrot.slane %v1331_v20, 6 }
0x28a0   :  { %v1342_v21 = vpop.permute.xlu0 %1341 }
0x28a1   :  { %1966 = vmatmul.mubr.msk.bf16.vlgmr.msra.gmra.mxu1 %vm115_vm2, %v1342_v21 }
0x28a2   :  { %1981 = vmatprep.mubr.msk.f32.mxu1 %vm2078_vm0, %v2077_v0 }
0x2961   :  { %v1380_v24 = vpop.f32.mrf.mxu1 }
0x2962   :  { %v1386_v25 = vadd.f32 %v1380_v24, %v1340_v22  ;;  %v1522_v24 = vadd.s32 1, %v1507_v17 }
0x2963   :  { %v1967_v26 = vpop.f32.mrf.mxu1 }
0x2964   :  { %2065 = vtanh.f32 %v1386_v25  ;;  %v1519_v25 = vmul.u32 2, %v1507_v17  ;;  %v1523_v26 = vmul.u32 2, %v1522_v24 }
0x2965   :  { %v1383_v28 = vpop.f32.mrf.mxu1 }
0x2966   :  { %v1518_v28 = vadd.s32 8, %v1509_v13  ;;  %vm1520_vm11 = vcmp.ge.s32.totalorder %v1509_v13, %v1519_v25  ;;  %vm1524_vm12 = vcmp.lt.s32.totalorder %v1509_v13, %v1523_v26 }
0x2967   :  { %v1968_v30 = vpop.f32.mrf.mxu1  ;;  %vm1526_vm13 = vmand %vm1520_vm11, %vm1524_vm12 }
0x2968   :  { %vm1521_vm14 = vcmp.ge.s32.totalorder %v1518_v28, %v1519_v25  ;;  %vm1525_vm15 = vcmp.lt.s32.totalorder %v1518_v28, %v1523_v26  ;;  %v1744_v30 = vsel %vm1526_vm13, 1.0, %v2077_v0 }
0x2969   :  { %vm1527_vm0 = vmand %vm1521_vm14, %vm1525_vm15 }
0x2971   :  { %v2066_v31 = vpop.eup %2065 }
0x2972   :  { %1392 = vrot.lane.b32.xlu1 %v2066_v31, %s2080_s18  ;;  %v1388_v33 = vadd.f32 1.0, %v2066_v31 }
0x2974   :  { %v1389_v34 = vmul.f32 0.5, %v1388_v33  ;;  %v1745_v33 = vsel %vm1527_vm0, 1.0, %v2077_v0 }
0x2976   :  { %v1390_v39 = vmul.f32 %v1389_v34, %v1324_v16  ;;  %v1512_v16 = vadd.s32 1, %v1509_v13 }
0x2978   :  { %v1513_v19 = vmul.u32 2, %v1512_v16 }
0x297a   :  { %vm1514_vm9 = vcmp.lt.s32.totalorder %v1507_v17, %v1513_v19 }
0x297b   :  { %vm1515_vm10 = vmand %vm1511_vm8, %vm1514_vm9 }
0x297c   :  { %v1743_v21 = vsel %vm1515_vm10, 1.0, %v2077_v0 }
0x29e4   :  { %v1393_v35 = vpop.permute.xlu1 %1392 }
0x29e5   :  { %v1395_v36 = vmul.f32 %v1393_v35, %v1389_v34 }
0x29e7   :  { %1397 = vrot.lane.b32.xlu0 %v1395_v36, %s2080_s18 }
0x29eb   :  { %881 = vrot.lane.b32.xlu0 %v2333_v27, %s2081_s3 }
0x29ef   :  { %1033 = vrot.lane.b32.xlu0 %v1032_v37, %s2081_s3 }
0x29f3   :  { %1184 = vrot.lane.b32.xlu0 %v2389_v45, %s2081_s3  ;;  %v956_v45 = vrot.slane %v2347_v32, 7 }
0x29f7   :  { %1336 = vrot.lane.b32.xlu0 %v1335_v38, %s2081_s3 }
0x2a59   :  { %v1398_v40 = vpop.permute.xlu0 %1397 }
0x2a5a   :  { %v1400_v41 = vadd.f32 %v1398_v40, %v1390_v39 }
0x2a5c   :  { %2067 = vtanh.f32 %v1400_v41 }
0x2a5d   :  { %v882_v42 = vpop.permute.xlu0 %881 }
0x2a5e   :  { %884 = vst.msk [vmem:[#allocation2] sm:$0x1] %vm187_vm3, %v882_v42 }
0x2a61   :  { %v1034_v43 = vpop.permute.xlu0 %1033 }
0x2a62   :  { %1036 = vst.msk [vmem:[#allocation2] sm:$0x4] %vm341_vm4, %v1034_v43 }
0x2a65   :  { %v1185_v27 = vpop.permute.xlu0 %1184 }
0x2a66   :  { %1187 = vst.msk [vmem:[#allocation2 + $0x4] sm:$0x1] %vm187_vm3, %v1185_v27 }
0x2a69   :  { %v2068_v63 = vpop.eup %2067  ;;  %v1337_v44 = vpop.permute.xlu0 %1336 }
0x2a6a   :  { %1339 = vst.msk [vmem:[#allocation2 + $0x4] sm:$0x4] %vm341_vm4, %v1337_v44  ;;  %1403 = vrot.lane.b32.xlu1 %v2068_v63, %s2080_s18 }
0x2a6e   :  { %957 = vrot.lane.b32.xlu1 %v956_v45, %s2081_s3 }
0x2a72   :  { %1109 = vrot.lane.b32.xlu1 %v1108_v46, %s2081_s3 }
0x2a76   :  { %1260 = vrot.lane.b32.xlu1 %v1259_v47, %s2081_s3 }
0x2adc   :  { %v1404_v32 = vpop.permute.xlu1 %1403 }
0x2add   :  { %v1406_v49 = vmul.f32 %v1404_v32, %v1389_v34 }
0x2adf   :  { %v1764_v23 = vpack.c.bf16 %v1406_v49, %v1406_v49 }
0x2ae0   :  { %v958_v50 = vpop.permute.xlu1 %957 }
0x2ae1   :  { %v1411_v52 = vrot.slane %v1764_v23, 5  ;;  %960 = vst.msk [vmem:[#allocation2] sm:$0x2] %vm264_vm5, %v958_v50 }
0x2ae3   :  { %1412 = vrot.lane.b32.xlu1 %v1411_v52, %s2081_s3 }
0x2ae4   :  { %v1110_v53 = vpop.permute.xlu1 %1109 }
0x2ae5   :  { %1112 = vst.msk [vmem:[#allocation2] sm:$0x8] %vm418_vm6, %v1110_v53 }
0x2ae8   :  { %v1261_v51 = vpop.permute.xlu1 %1260 }
0x2ae9   :  { %1263 = vst.msk [vmem:[#allocation2 + $0x4] sm:$0x2] %vm264_vm5, %v1261_v51 }
0x2b55   :  { %v1413_v54 = vpop.permute.xlu1 %1412 }
0x2b56   :  { %1415 = vst.msk [vmem:[#allocation2 + $0x4] sm:$0x8] %vm418_vm6, %v1413_v54 }
0x2b5d   :  { %v2004_v55 = vld [vmem:[#allocation2] sm:$0xff]  }
0x2b5e   :  { %1974 = vmatmul.mubr.msk.bf16.vlgmr.msra.gmra.mxu0 %vm115_vm2, %v2004_v55 }
0x2b5f   :  { %1986 = vmatprep.mubr.msk.f32.mxu0 %vm1490_vm7, %v1744_v30 }
0x2c1e   :  { %v1483_v56 = vpop.f32.mrf.mxu0 }
0x2c1f   :  { %v1484_v57 = vadd.f32 %v1738_v29, %v1483_v56 }
0x2c20   :  { %v1975_v58 = vpop.f32.mrf.mxu0 }
0x2c21   :  { %v1491_v61 = vsel %vm1490_vm7, %v1484_v57, -inf }
0x2c22   :  { %v1486_v2 = vpop.f32.mrf.mxu0 }
0x2c23   :  { %v1487_v59 = vadd.f32 %v1738_v29, %v1486_v2 }
0x2c24   :  { %v1976_v60 = vpop.f32.mrf.mxu0 }
0x2c25   :  { %v1492_v62 = vsel %vm1490_vm7, %v1487_v59, -inf }
0x2c26   :  { %v1493_v7 = vmax.f32 %v1491_v61, %v1492_v62 }
0x2c28   :  { %v1494_v6 = vrot.slane %v1493_v7, 4 }
0x2c2a   :  { %v1495_v1 = vmax.f32 %v1493_v7, %v1494_v6 }
0x2c2c   :  { %v1496_v3 = vrot.slane %v1495_v1, 2 }
0x2c2e   :  { %v1497_v4 = vmax.f32 %v1495_v1, %v1496_v3 }
0x2c30   :  { %v1498_v5 = vrot.slane %v1497_v4, 1 }
0x2c32   :  { %v1499_v9 = vmax.f32 %v1497_v4, %v1498_v5 }
0x2c34   :  { %v1500_v11 = vsub.f32 %v1484_v57, %v1499_v9  ;;  %v1501_v12 = vsub.f32 %v1487_v59, %v1499_v9 }
0x2c36   :  { %v1504_v14 = vmul.f32 1.442695, %v1501_v12  ;;  %v1502_v15 = vmul.f32 1.442695, %v1500_v11 }
0x2c38   :  { %2069 = vpow2.f32 %v1504_v14 }
0x2c39   :  { %2071 = vpow2.f32 %v1502_v15 }
0x2c45   :  { %v2070_v20 = vpop.eup %2069 }
0x2c46   :  { %1978 = vmatpush3.msra.mxu1 %v2070_v20  ;;  %v2072_v22 = vpop.eup %2071 }
0x2c47   :  { %1979 = vmatprep.subr.mxu1 %v2077_v0 }
0x2c48   :  { %1980 = vmatpush3.msra.mxu1 %v2072_v22 }
0x2c49   :  { %1982 = vmatmul.mubr.msk.f32.vlgmr.msra.gmra.mxu1 %vm51_vm1, %v1743_v21 }
0x2d09   :  { %v1601_v31 = vpop.f32.mrf.mxu1 }
0x2d0a   :  { %1984 = vmatprep.subr.mxu0 %v1601_v31 }
0x2d0b   :  { %v1983_v34 = vpop.f32.mrf.mxu1  ;;  %1985 = vmatpush3.msra.mxu0 %v1601_v31 }
0x2d0c   :  { %1987 = vmatmul.mubr.msk.f32.vlgmr.msra.gmra.mxu0 %vm1490_vm7, %v1745_v33 }
0x2dcc   :  { %v1988_v35 = vpop.f32.mrf.mxu0 }
0x2dcd   :  { %2073 = vrcp.f32 %v1988_v35 }
0x2dce   :  { %v1677_v36 = vpop.f32.mrf.mxu0 }
0x2dcf   :  { %2075 = vrcp.f32 %v1677_v36 }
0x2dda   :  { %v2074_v37 = vpop.eup %2073 }
0x2ddb   :  { %v1689_v38 = vmul.f32 %v2074_v37, %v2070_v20 }
0x2ddc   :  { %v2076_v39 = vpop.eup %2075 }
0x2ddd   :  { %1691 = vst.msk [vmem:[%s2479_s9 + $0x8] sm:$0xff] %vm1490_vm7, %v1689_v38  ;;  %v1688_v40 = vmul.f32 %v2076_v39, %v2072_v22 }
0x2ddf   :  { %1690 = vst.msk [vmem:[%s2479_s9] sm:$0xff] %vm1490_vm7, %v1688_v40 }

</bundles_post_ra>
